<compile_context>
chip_gen: v7x
topology: tpu7x:2x2x1
jax: 0.10.0
libtpu: 0.0.40
codegen_flags: <defaults>
</compile_context>

<pallas_src>
import jax
import jax.numpy as jnp
from jax import lax
from jax.experimental import pallas as pl
from jax.experimental.pallas import tpu as pltpu


# ---------------------------------------------------------------------------
# Fused kernel: one grid step = (batch tile b, time tile t)
#   per unrolled time step:
#     p_t   = x_t @ W_ih^T + (b_ih + b_hh)        (independent of the serial chain)
#     h_t   = tanh(p_t + h_{t-1} @ W_hh^T)
# The hidden state carry lives in a VMEM scratch that persists across time tiles.
# ---------------------------------------------------------------------------
def _fused_rnn_kernel(x_ref, wih_ref, bias_ref, whh_ref, h0_ref, y_ref, h_sc):
    """
    x_ref    : (tt, bb, I)   f32       input time-tile
    wih_ref  : (I,  Hp)      bf16/f32  W_ih^T        (constant block index)
    bias_ref : (1,  Hp)      f32       b_ih + b_hh   (constant block index)
    whh_ref  : (Hp, Hp)      bf16/f32  W_hh^T        (constant block index)
    h0_ref   : (bb, Hp)      f32       initial hidden state for this batch tile
    y_ref    : (tt, bb, Hp)  f32 out   hidden states for this time tile (lane-dense)
    h_sc     : (bb, Hp)      f32       carry scratch, persists across time tiles
    """
    t_blk = pl.program_id(1)

    @pl.when(t_blk == 0)
    def _():
        h_sc[...] = h0_ref[...]

    tt = x_ref.shape[0]
    mx_dtype = wih_ref.dtype          # bf16 on the fast path, f32 on the exact path
    wih = wih_ref[...]                # hoisted loads; reused by every unrolled step
    whh = whh_ref[...]
    bias = bias_ref[...]

    # TODO(synk): push W_hh^T into MXU weight registers once (pltpu.matmul_push_rhs)
    #             instead of re-supplying the RHS on every jnp.dot.
    def step(t, h):
        # Input projection of step t: independent of h, so the unrolled schedule can
        # overlap it with the serial h -> dot -> tanh chain of neighbouring steps.
        p_t = (
            jnp.dot(x_ref[t].astype(mx_dtype), wih,
                    preferred_element_type=jnp.float32)
            + bias
        )
        h_new = jnp.tanh(
            p_t
            + jnp.dot(h.astype(mx_dtype), whh, preferred_element_type=jnp.float32)
        )
        y_ref[t] = h_new
        return h_new

    # Unrolled so the store / EUP(tanh) of step t overlaps the MXU of step t+1.
    h_sc[...] = lax.fori_loop(0, tt, step, h_sc[...], unroll=True)


# ---------------------------------------------------------------------------
# Hardware detection & tile planning
# ---------------------------------------------------------------------------
def _round_up(n, m):
    return ((n + m - 1) // m) * m


def _tpu_generation():
    """Best-effort TPU generation (4/5/6/7); defaults to 6 if undetectable."""
    try:
        kind = jax.devices()[0].device_kind.lower()
        for gen in (7, 6, 5, 4):
            if (f"v{gen}" in kind) or (f"tpu{gen}" in kind):
                return gen
    except Exception:
        pass
    return 6


def _vmem_capacity_bytes(gen):
    """Per-TensorCore physical VMEM (conservatively capped by generation)."""
    gen_cap = (64 if gen >= 7 else 128) * 1024 * 1024
    try:
        return min(int(pltpu.get_tpu_info().vmem_capacity_bytes), gen_cap)
    except Exception:
        return gen_cap


def _choose_batch_tile(b_pad, cap):
    """Largest multiple of 8 that divides b_pad, not exceeding cap."""
    cap = max(8, min(cap, b_pad))
    cap = (cap // 8) * 8
    for cand in range(cap, 7, -8):
        if b_pad % cand == 0:
            return cand
    return 8


def _choose_time_tile(n_t, tt_max):
    """Pick tt <= tt_max minimizing time padding while keeping the tile large."""
    tt_max = max(1, min(tt_max, n_t))
    lo = max(1, tt_max // 2)
    best, best_waste = tt_max, _round_up(n_t, tt_max) - n_t
    for cand in range(tt_max, lo - 1, -1):
        waste = _round_up(n_t, cand) - n_t
        if waste < best_waste:
            best, best_waste = cand, waste
    return best


def _plan_tiles(n_t, b_pad, n_i, hp, w_bytes, weight_buffers, budget_bytes,
                split_batch_for_cores):
    """Derive (tt, bb) from an explicit VMEM budget.

    Working set per grid step:
      weights  : weight_buffers * ((I*Hp + Hp*Hp)*w_bytes + Hp*4)   (W_ih^T, W_hh^T, bias)
      x tile   : 2 * tt*bb*I*4      (double-buffered f32 input)
      y tile   : 2 * tt*bb*Hp*4     (double-buffered f32 output)
      h0 block : 2 * bb*Hp*4
      carry    :     bb*Hp*4
    """
    bb_cap = b_pad
    if split_batch_for_cores and b_pad >= 16:
        bb_cap = b_pad // 2          # guarantee >=2 batch tiles so both v7x TCs get work
    bb = _choose_batch_tile(b_pad, min(bb_cap, 512))

    def need(tt_, bb_):
        weights = weight_buffers * ((n_i * hp + hp * hp) * w_bytes + hp * 4)
        per_txb = tt_ * bb_ * (2 * n_i * 4 + 2 * hp * 4)
        per_b = 3 * bb_ * hp * 4
        return weights + per_txb + per_b

    tt = 16
    while tt > 1 and need(tt, bb) > budget_bytes:
        tt //= 2
    while bb > 8 and need(tt, bb) > budget_bytes:
        bb = _choose_batch_tile(b_pad, bb - 8)
    tt = _choose_time_tile(n_t, tt)
    return tt, bb


# ---------------------------------------------------------------------------
# pallas_call wrapper
# ---------------------------------------------------------------------------
_SINGLE_BUFFER_OK = None   # cached: does this JAX accept pipeline_mode=pl.Buffered(1)?


def _pallas_rnn(x_p, wih_t, bias, whh_t, h0_p, *, tt, bb, vmem_limit, single_buffer):
    t_pad, b_pad, n_i = x_p.shape
    hp = whh_t.shape[0]

    const_kw = {"pipeline_mode": pl.Buffered(1)} if single_buffer else {}
    in_specs = [
        pl.BlockSpec((tt, bb, n_i), lambda bq, tq: (tq, bq, 0)),          # x tile
        pl.BlockSpec((n_i, hp), lambda bq, tq: (0, 0), **const_kw),       # W_ih^T (constant)
        pl.BlockSpec((1, hp), lambda bq, tq: (0, 0), **const_kw),         # bias   (constant)
        pl.BlockSpec((hp, hp), lambda bq, tq: (0, 0), **const_kw),        # W_hh^T (constant)
        pl.BlockSpec((bb, hp), lambda bq, tq: (bq, 0)),                   # h0 tile
    ]
    out_specs = pl.BlockSpec((tt, bb, hp), lambda bq, tq: (tq, bq, 0))    # y tile

    return pl.pallas_call(
        _fused_rnn_kernel,
        out_shape=jax.ShapeDtypeStruct((t_pad, b_pad, hp), jnp.float32),
        grid_spec=pltpu.PrefetchScalarGridSpec(
            num_scalar_prefetch=0,
            grid=(b_pad // bb, t_pad // tt),
            in_specs=in_specs,
            out_specs=out_specs,
            scratch_shapes=[pltpu.VMEM((bb, hp), jnp.float32)],           # h carry
        ),
        compiler_params=pltpu.CompilerParams(
            # batch axis: parallel (megacore sharding on v7x); time axis: serial recurrence.
            dimension_semantics=("parallel", "arbitrary"),
            vmem_limit_bytes=int(vmem_limit),
        ),
    )(x_p, wih_t, bias, whh_t, h0_p)


def rnn_forward(x, w_ih, w_hh, b_ih, b_hh, h0, *, use_bf16=True):
    """x: (T, B, I); w_ih: (H, I); w_hh: (H, H); b_ih, b_hh: (H,); h0: (B, H).

    Returns (y: (T, B, H), h_n: (B, H)) — identical semantics to PyTorch nn.RNN
    (single layer, unidirectional, tanh), the canonical BaseRNN forward.
    use_bf16=True runs the MXU with bf16 operands / f32 accumulation (adds + tanh stay f32);
    use_bf16=False keeps everything f32.
    """
    global _SINGLE_BUFFER_OK
    n_t, n_b, n_i = x.shape
    n_h = w_ih.shape[0]

    gen = _tpu_generation()
    lane_align = 256 if gen >= 6 else 128            # v6e/v7x MXU is 2x256^2
    b_pad = _round_up(n_b, 8)
    hp = _round_up(n_h, lane_align)

    mx_dtype = jnp.bfloat16 if use_bf16 else jnp.float32
    w_bytes = jnp.dtype(mx_dtype).itemsize

    phys = _vmem_capacity_bytes(gen)
    budget = int(phys * 0.70)                        # headroom for compiler internal scratch
    vmem_limit = int(phys * 0.90)

    # Zero-padding keeps padded hidden lanes exactly 0, and padded batch rows /
    # trailing time steps independent of the valid region (all sliced off below).
    xf = x.astype(jnp.float32)
    h0_p = jnp.pad(h0.astype(jnp.float32), ((0, b_pad - n_b), (0, hp - n_h)))
    wih_t = jnp.pad(w_ih.T.astype(jnp.float32), ((0, 0), (0, hp - n_h))).astype(mx_dtype)
    whh_t = jnp.pad(w_hh.T.astype(jnp.float32),
                    ((0, hp - n_h), (0, hp - n_h))).astype(mx_dtype)
    bias = jnp.pad((b_ih + b_hh).astype(jnp.float32), (0, hp - n_h)).reshape(1, hp)

    def _run_variant(single_buffer):
        weight_buffers = 1 if single_buffer else 2
        tt, bb = _plan_tiles(n_t, b_pad, n_i, hp, w_bytes, weight_buffers, budget,
                             split_batch_for_cores=(gen >= 7))
        t_pad = _round_up(n_t, tt)
        x_p = jnp.pad(xf, ((0, t_pad - n_t), (0, b_pad - n_b), (0, 0)))
        return _pallas_rnn(x_p, wih_t, bias, whh_t, h0_p,
                           tt=tt, bb=bb, vmem_limit=vmem_limit,
                           single_buffer=single_buffer)

    if _SINGLE_BUFFER_OK is None:
        try:
            y_p = _run_variant(True)
            _SINGLE_BUFFER_OK = True
        except Exception:
            # TODO(synk): pipeline_mode=pl.Buffered(1) rejected by this JAX/Mosaic version;
            # fall back to default double-buffering (tiles re-planned for 2x weight buffers).
            _SINGLE_BUFFER_OK = False
            y_p = _run_variant(False)
    else:
        y_p = _run_variant(_SINGLE_BUFFER_OK)

    y = y_p[:n_t, :n_b, :n_h]
    h_n = y[-1]                       # final hidden state = last *valid* time step
    return y, h_n


# ---------------------------------------------------------------------------
# Pure-JAX reference (lax.scan) for validation.
# mxu_dtype mimics the kernel's matmul-operand cast (f32 = exact PyTorch semantics).
# ---------------------------------------------------------------------------
def rnn_forward_ref(x, w_ih, w_hh, b_ih, b_hh, h0, mxu_dtype=jnp.float32):
    wih_t = w_ih.T.astype(mxu_dtype)
    whh_t = w_hh.T.astype(mxu_dtype)
    bias = (b_ih + b_hh).astype(jnp.float32)

    def step(h, x_t):
        p = jnp.dot(x_t.astype(mxu_dtype), wih_t,
                    preferred_element_type=jnp.float32) + bias
        h_new = jnp.tanh(
            p + jnp.dot(h.astype(mxu_dtype), whh_t, preferred_element_type=jnp.float32))
        return h_new, h_new

    h_n, ys = lax.scan(step, h0.astype(jnp.float32), x.astype(jnp.float32))
    return ys, h_n


if __name__ == "__main__":
    # Small shapes: seq=8, batch=4, input=16, hidden=32.
    T, B, I, H = 8, 4, 16, 32

    key = jax.random.PRNGKey(0)
    kx, k1, k2, k3, k4 = jax.random.split(key, 5)

    # PyTorch-style init: uniform(-1/sqrt(H), 1/sqrt(H)).
    bound = 1.0 / jnp.sqrt(jnp.float32(H))
    x = jax.random.normal(kx, (T, B, I), dtype=jnp.float32)
    h0 = jnp.zeros((B, H), dtype=jnp.float32)
    w_ih = jax.random.uniform(k1, (H, I), jnp.float32, -bound, bound)
    w_hh = jax.random.uniform(k2, (H, H), jnp.float32, -bound, bound)
    b_ih = jax.random.uniform(k3, (H,), jnp.float32, -bound, bound)
    b_hh = jax.random.uniform(k4, (H,), jnp.float32, -bound, bound)

    # ---- exact path: f32 MXU operands vs pure-f32 reference -----------------
    y32, hn32 = rnn_forward(x, w_ih, w_hh, b_ih, b_hh, h0, use_bf16=False)
    jax.block_until_ready((y32, hn32))
    y_ref, hn_ref = rnn_forward_ref(x, w_ih, w_hh, b_ih, b_hh, h0)
    assert jnp.allclose(y32, y_ref, atol=2e-5, rtol=2e-5), "f32 y mismatch"
    assert jnp.allclose(hn32, hn_ref, atol=2e-5, rtol=2e-5), "f32 h_n mismatch"

    # ---- fast path: bf16 MXU operands, f32 accumulate / adds / tanh ---------
    y, h_n = rnn_forward(x, w_ih, w_hh, b_ih, b_hh, h0, use_bf16=True)
    jax.block_until_ready((y, h_n))
    y_refq, hn_refq = rnn_forward_ref(x, w_ih, w_hh, b_ih, b_hh, h0,
                                      mxu_dtype=jnp.bfloat16)
    assert jnp.allclose(y, y_refq, atol=1e-4, rtol=1e-4), "bf16 y mismatch (vs bf16-op ref)"
    assert jnp.allclose(h_n, hn_refq, atol=1e-4, rtol=1e-4), "bf16 h_n mismatch (vs bf16-op ref)"
    assert jnp.allclose(y, y_ref, atol=3e-2, rtol=3e-2), "bf16 y drifted from f32 reference"

    print("KERNEL_OK")
</pallas_src>

<mosaic_0001>
module attributes {stable_mosaic.version = 11 : i64} {
  func.func @_fused_rnn_kernel(%arg0: i32, %arg1: i32, %arg2: memref<8x8x16xf32, #tpu.memory_space<vmem>>, %arg3: memref<16x256xf32, #tpu.memory_space<vmem>>, %arg4: memref<1x256xf32, #tpu.memory_space<vmem>>, %arg5: memref<256x256xf32, #tpu.memory_space<vmem>>, %arg6: memref<8x256xf32, #tpu.memory_space<vmem>>, %arg7: memref<8x8x256xf32, #tpu.memory_space<vmem>>, %arg8: memref<8x256xf32, #tpu.memory_space<vmem>>) attributes {dimension_semantics = [#tpu.dimension_semantics<parallel>, #tpu.dimension_semantics<arbitrary>], iteration_bounds = array<i64: 1, 1>, scalar_prefetch = 0 : i64, scratch_operands = 1 : i64, tpu.core_type = #tpu.core_type<tc>, window_params = [{transform_indices = @transform_0, window_bounds = array<i64: 8, 8, 16>}, {pipeline_mode = #tpu.pipeline_mode<synchronous>, transform_indices = @transform_1, window_bounds = array<i64: 16, 256>}, {pipeline_mode = #tpu.pipeline_mode<synchronous>, transform_indices = @transform_2, window_bounds = array<i64: 1, 256>}, {pipeline_mode = #tpu.pipeline_mode<synchronous>, transform_indices = @transform_3, window_bounds = array<i64: 256, 256>}, {transform_indices = @transform_4, window_bounds = array<i64: 8, 256>}, {transform_indices = @transform_5, window_bounds = array<i64: 8, 8, 256>}]} {
    %c0_i32 = arith.constant 0 : i32
    %0 = arith.cmpi eq, %arg1, %c0_i32 : i32
    %1 = arith.extui %0 : i1 to i32
    %c0_i32_0 = arith.constant 0 : i32
    %2 = arith.cmpi ne, %1, %c0_i32_0 : i32
    scf.if %2 {
      %c0_58 = arith.constant 0 : index
      %c0_59 = arith.constant 0 : index
      %112 = vector.load %arg6[%c0_58, %c0_59] : memref<8x256xf32, #tpu.memory_space<vmem>>, vector<8x256xf32>
      %c0_60 = arith.constant 0 : index
      %c0_61 = arith.constant 0 : index
      %113 = vector.load %arg8[%c0_60, %c0_61] : memref<8x256xf32, #tpu.memory_space<vmem>>, vector<8x256xf32>
      tpu.vector_store %arg8[%c0_60, %c0_61], %112 {strides = array<i32>} : memref<8x256xf32, #tpu.memory_space<vmem>>, vector<8x256xf32>,
    } else {
    }
    %c0 = arith.constant 0 : index
    %c0_1 = arith.constant 0 : index
    %3 = vector.load %arg3[%c0, %c0_1] : memref<16x256xf32, #tpu.memory_space<vmem>>, vector<16x256xf32>
    %c0_2 = arith.constant 0 : index
    %c0_3 = arith.constant 0 : index
    %4 = vector.load %arg5[%c0_2, %c0_3] : memref<256x256xf32, #tpu.memory_space<vmem>>, vector<256x256xf32>
    %c0_4 = arith.constant 0 : index
    %c0_5 = arith.constant 0 : index
    %5 = vector.load %arg4[%c0_4, %c0_5] : memref<1x256xf32, #tpu.memory_space<vmem>>, vector<1x256xf32>
    %c0_6 = arith.constant 0 : index
    %c0_7 = arith.constant 0 : index
    %6 = vector.load %arg8[%c0_6, %c0_7] : memref<8x256xf32, #tpu.memory_space<vmem>>, vector<8x256xf32>
    %c0_i32_8 = arith.constant 0 : i32
    %7 = arith.index_cast %c0_i32_8 : i32 to index
    %c0_9 = arith.constant 0 : index
    %c0_10 = arith.constant 0 : index
    %8 = vector.load %arg2[%7, %c0_9, %c0_10] : memref<8x8x16xf32, #tpu.memory_space<vmem>>, vector<1x8x16xf32>
    %9 = vector.shape_cast %8 : vector<1x8x16xf32> to vector<8x16xf32>
    %cst = arith.constant dense<0.000000e+00> : vector<8x256xf32>
    %10 = tpu.matmul %9, %3, %cst {dimension_numbers = #tpu.dot_dimension_numbers<[1], [0], [0], [1], [0, 0, 1, 1], [], []>} : vector<8x16xf32>, vector<16x256xf32>, vector<8x256xf32> -> vector<8x256xf32>
    %11 = vector.broadcast %5 : vector<1x256xf32> to vector<8x256xf32>
    %12 = arith.addf %10, %11 : vector<8x256xf32>
    %cst_11 = arith.constant dense<0.000000e+00> : vector<8x256xf32>
    %13 = tpu.matmul %6, %4, %cst_11 {dimension_numbers = #tpu.dot_dimension_numbers<[1], [0], [0], [1], [0, 0, 1, 1], [], []>} : vector<8x256xf32>, vector<256x256xf32>, vector<8x256xf32> -> vector<8x256xf32>
    %14 = arith.addf %12, %13 : vector<8x256xf32>
    %15 = math.tanh %14 : vector<8x256xf32>
    %16 = arith.index_cast %c0_i32_8 : i32 to index
    %c0_12 = arith.constant 0 : index
    %c0_13 = arith.constant 0 : index
    %17 = vector.load %arg7[%16, %c0_12, %c0_13] : memref<8x8x256xf32, #tpu.memory_space<vmem>>, vector<1x8x256xf32>
    %18 = vector.shape_cast %17 : vector<1x8x256xf32> to vector<8x256xf32>
    %19 = vector.shape_cast %15 : vector<8x256xf32> to vector<1x8x256xf32>
    tpu.vector_store %arg7[%16, %c0_12, %c0_13], %19 {strides = array<i32>} : memref<8x8x256xf32, #tpu.memory_space<vmem>>, vector<1x8x256xf32>,
    %c1_i32 = arith.constant 1 : i32
    %20 = arith.index_cast %c1_i32 : i32 to index
    %c0_14 = arith.constant 0 : index
    %c0_15 = arith.constant 0 : index
    %21 = vector.load %arg2[%20, %c0_14, %c0_15] : memref<8x8x16xf32, #tpu.memory_space<vmem>>, vector<1x8x16xf32>
    %22 = vector.shape_cast %21 : vector<1x8x16xf32> to vector<8x16xf32>
    %cst_16 = arith.constant dense<0.000000e+00> : vector<8x256xf32>
    %23 = tpu.matmul %22, %3, %cst_16 {dimension_numbers = #tpu.dot_dimension_numbers<[1], [0], [0], [1], [0, 0, 1, 1], [], []>} : vector<8x16xf32>, vector<16x256xf32>, vector<8x256xf32> -> vector<8x256xf32>
    %24 = vector.broadcast %5 : vector<1x256xf32> to vector<8x256xf32>
    %25 = arith.addf %23, %24 : vector<8x256xf32>
    %cst_17 = arith.constant dense<0.000000e+00> : vector<8x256xf32>
    %26 = tpu.matmul %15, %4, %cst_17 {dimension_numbers = #tpu.dot_dimension_numbers<[1], [0], [0], [1], [0, 0, 1, 1], [], []>} : vector<8x256xf32>, vector<256x256xf32>, vector<8x256xf32> -> vector<8x256xf32>
    %27 = arith.addf %25, %26 : vector<8x256xf32>
    %28 = math.tanh %27 : vector<8x256xf32>
    %29 = arith.index_cast %c1_i32 : i32 to index
    %c0_18 = arith.constant 0 : index
    %c0_19 = arith.constant 0 : index
    %30 = vector.load %arg7[%29, %c0_18, %c0_19] : memref<8x8x256xf32, #tpu.memory_space<vmem>>, vector<1x8x256xf32>
    %31 = vector.shape_cast %30 : vector<1x8x256xf32> to vector<8x256xf32>
    %32 = vector.shape_cast %28 : vector<8x256xf32> to vector<1x8x256xf32>
    tpu.vector_store %arg7[%29, %c0_18, %c0_19], %32 {strides = array<i32>} : memref<8x8x256xf32, #tpu.memory_space<vmem>>, vector<1x8x256xf32>,
    %c2_i32 = arith.constant 2 : i32
    %33 = arith.index_cast %c2_i32 : i32 to index
    %c0_20 = arith.constant 0 : index
    %c0_21 = arith.constant 0 : index
    %34 = vector.load %arg2[%33, %c0_20, %c0_21] : memref<8x8x16xf32, #tpu.memory_space<vmem>>, vector<1x8x16xf32>
    %35 = vector.shape_cast %34 : vector<1x8x16xf32> to vector<8x16xf32>
    %cst_22 = arith.constant dense<0.000000e+00> : vector<8x256xf32>
    %36 = tpu.matmul %35, %3, %cst_22 {dimension_numbers = #tpu.dot_dimension_numbers<[1], [0], [0], [1], [0, 0, 1, 1], [], []>} : vector<8x16xf32>, vector<16x256xf32>, vector<8x256xf32> -> vector<8x256xf32>
    %37 = vector.broadcast %5 : vector<1x256xf32> to vector<8x256xf32>
    %38 = arith.addf %36, %37 : vector<8x256xf32>
    %cst_23 = arith.constant dense<0.000000e+00> : vector<8x256xf32>
    %39 = tpu.matmul %28, %4, %cst_23 {dimension_numbers = #tpu.dot_dimension_numbers<[1], [0], [0], [1], [0, 0, 1, 1], [], []>} : vector<8x256xf32>, vector<256x256xf32>, vector<8x256xf32> -> vector<8x256xf32>
    %40 = arith.addf %38, %39 : vector<8x256xf32>
    %41 = math.tanh %40 : vector<8x256xf32>
    %42 = arith.index_cast %c2_i32 : i32 to index
    %c0_24 = arith.constant 0 : index
    %c0_25 = arith.constant 0 : index
    %43 = vector.load %arg7[%42, %c0_24, %c0_25] : memref<8x8x256xf32, #tpu.memory_space<vmem>>, vector<1x8x256xf32>
    %44 = vector.shape_cast %43 : vector<1x8x256xf32> to vector<8x256xf32>
    %45 = vector.shape_cast %41 : vector<8x256xf32> to vector<1x8x256xf32>
    tpu.vector_store %arg7[%42, %c0_24, %c0_25], %45 {strides = array<i32>} : memref<8x8x256xf32, #tpu.memory_space<vmem>>, vector<1x8x256xf32>,
    %c3_i32 = arith.constant 3 : i32
    %46 = arith.index_cast %c3_i32 : i32 to index
    %c0_26 = arith.constant 0 : index
    %c0_27 = arith.constant 0 : index
    %47 = vector.load %arg2[%46, %c0_26, %c0_27] : memref<8x8x16xf32, #tpu.memory_space<vmem>>, vector<1x8x16xf32>
    %48 = vector.shape_cast %47 : vector<1x8x16xf32> to vector<8x16xf32>
    %cst_28 = arith.constant dense<0.000000e+00> : vector<8x256xf32>
    %49 = tpu.matmul %48, %3, %cst_28 {dimension_numbers = #tpu.dot_dimension_numbers<[1], [0], [0], [1], [0, 0, 1, 1], [], []>} : vector<8x16xf32>, vector<16x256xf32>, vector<8x256xf32> -> vector<8x256xf32>
    %50 = vector.broadcast %5 : vector<1x256xf32> to vector<8x256xf32>
    %51 = arith.addf %49, %50 : vector<8x256xf32>
    %cst_29 = arith.constant dense<0.000000e+00> : vector<8x256xf32>
    %52 = tpu.matmul %41, %4, %cst_29 {dimension_numbers = #tpu.dot_dimension_numbers<[1], [0], [0], [1], [0, 0, 1, 1], [], []>} : vector<8x256xf32>, vector<256x256xf32>, vector<8x256xf32> -> vector<8x256xf32>
    %53 = arith.addf %51, %52 : vector<8x256xf32>
    %54 = math.tanh %53 : vector<8x256xf32>
    %55 = arith.index_cast %c3_i32 : i32 to index
    %c0_30 = arith.constant 0 : index
    %c0_31 = arith.constant 0 : index
    %56 = vector.load %arg7[%55, %c0_30, %c0_31] : memref<8x8x256xf32, #tpu.memory_space<vmem>>, vector<1x8x256xf32>
    %57 = vector.shape_cast %56 : vector<1x8x256xf32> to vector<8x256xf32>
    %58 = vector.shape_cast %54 : vector<8x256xf32> to vector<1x8x256xf32>
    tpu.vector_store %arg7[%55, %c0_30, %c0_31], %58 {strides = array<i32>} : memref<8x8x256xf32, #tpu.memory_space<vmem>>, vector<1x8x256xf32>,
    %c4_i32 = arith.constant 4 : i32
    %59 = arith.index_cast %c4_i32 : i32 to index
    %c0_32 = arith.constant 0 : index
    %c0_33 = arith.constant 0 : index
    %60 = vector.load %arg2[%59, %c0_32, %c0_33] : memref<8x8x16xf32, #tpu.memory_space<vmem>>, vector<1x8x16xf32>
    %61 = vector.shape_cast %60 : vector<1x8x16xf32> to vector<8x16xf32>
    %cst_34 = arith.constant dense<0.000000e+00> : vector<8x256xf32>
    %62 = tpu.matmul %61, %3, %cst_34 {dimension_numbers = #tpu.dot_dimension_numbers<[1], [0], [0], [1], [0, 0, 1, 1], [], []>} : vector<8x16xf32>, vector<16x256xf32>, vector<8x256xf32> -> vector<8x256xf32>
    %63 = vector.broadcast %5 : vector<1x256xf32> to vector<8x256xf32>
    %64 = arith.addf %62, %63 : vector<8x256xf32>
    %cst_35 = arith.constant dense<0.000000e+00> : vector<8x256xf32>
    %65 = tpu.matmul %54, %4, %cst_35 {dimension_numbers = #tpu.dot_dimension_numbers<[1], [0], [0], [1], [0, 0, 1, 1], [], []>} : vector<8x256xf32>, vector<256x256xf32>, vector<8x256xf32> -> vector<8x256xf32>
    %66 = arith.addf %64, %65 : vector<8x256xf32>
    %67 = math.tanh %66 : vector<8x256xf32>
    %68 = arith.index_cast %c4_i32 : i32 to index
    %c0_36 = arith.constant 0 : index
    %c0_37 = arith.constant 0 : index
    %69 = vector.load %arg7[%68, %c0_36, %c0_37] : memref<8x8x256xf32, #tpu.memory_space<vmem>>, vector<1x8x256xf32>
    %70 = vector.shape_cast %69 : vector<1x8x256xf32> to vector<8x256xf32>
    %71 = vector.shape_cast %67 : vector<8x256xf32> to vector<1x8x256xf32>
    tpu.vector_store %arg7[%68, %c0_36, %c0_37], %71 {strides = array<i32>} : memref<8x8x256xf32, #tpu.memory_space<vmem>>, vector<1x8x256xf32>,
    %c5_i32 = arith.constant 5 : i32
    %72 = arith.index_cast %c5_i32 : i32 to index
    %c0_38 = arith.constant 0 : index
    %c0_39 = arith.constant 0 : index
    %73 = vector.load %arg2[%72, %c0_38, %c0_39] : memref<8x8x16xf32, #tpu.memory_space<vmem>>, vector<1x8x16xf32>
    %74 = vector.shape_cast %73 : vector<1x8x16xf32> to vector<8x16xf32>
    %cst_40 = arith.constant dense<0.000000e+00> : vector<8x256xf32>
    %75 = tpu.matmul %74, %3, %cst_40 {dimension_numbers = #tpu.dot_dimension_numbers<[1], [0], [0], [1], [0, 0, 1, 1], [], []>} : vector<8x16xf32>, vector<16x256xf32>, vector<8x256xf32> -> vector<8x256xf32>
    %76 = vector.broadcast %5 : vector<1x256xf32> to vector<8x256xf32>
    %77 = arith.addf %75, %76 : vector<8x256xf32>
    %cst_41 = arith.constant dense<0.000000e+00> : vector<8x256xf32>
    %78 = tpu.matmul %67, %4, %cst_41 {dimension_numbers = #tpu.dot_dimension_numbers<[1], [0], [0], [1], [0, 0, 1, 1], [], []>} : vector<8x256xf32>, vector<256x256xf32>, vector<8x256xf32> -> vector<8x256xf32>
    %79 = arith.addf %77, %78 : vector<8x256xf32>
    %80 = math.tanh %79 : vector<8x256xf32>
    %81 = arith.index_cast %c5_i32 : i32 to index
    %c0_42 = arith.constant 0 : index
    %c0_43 = arith.constant 0 : index
    %82 = vector.load %arg7[%81, %c0_42, %c0_43] : memref<8x8x256xf32, #tpu.memory_space<vmem>>, vector<1x8x256xf32>
    %83 = vector.shape_cast %82 : vector<1x8x256xf32> to vector<8x256xf32>
    %84 = vector.shape_cast %80 : vector<8x256xf32> to vector<1x8x256xf32>
    tpu.vector_store %arg7[%81, %c0_42, %c0_43], %84 {strides = array<i32>} : memref<8x8x256xf32, #tpu.memory_space<vmem>>, vector<1x8x256xf32>,
    %c6_i32 = arith.constant 6 : i32
    %85 = arith.index_cast %c6_i32 : i32 to index
    %c0_44 = arith.constant 0 : index
    %c0_45 = arith.constant 0 : index
    %86 = vector.load %arg2[%85, %c0_44, %c0_45] : memref<8x8x16xf32, #tpu.memory_space<vmem>>, vector<1x8x16xf32>
    %87 = vector.shape_cast %86 : vector<1x8x16xf32> to vector<8x16xf32>
    %cst_46 = arith.constant dense<0.000000e+00> : vector<8x256xf32>
    %88 = tpu.matmul %87, %3, %cst_46 {dimension_numbers = #tpu.dot_dimension_numbers<[1], [0], [0], [1], [0, 0, 1, 1], [], []>} : vector<8x16xf32>, vector<16x256xf32>, vector<8x256xf32> -> vector<8x256xf32>
    %89 = vector.broadcast %5 : vector<1x256xf32> to vector<8x256xf32>
    %90 = arith.addf %88, %89 : vector<8x256xf32>
    %cst_47 = arith.constant dense<0.000000e+00> : vector<8x256xf32>
    %91 = tpu.matmul %80, %4, %cst_47 {dimension_numbers = #tpu.dot_dimension_numbers<[1], [0], [0], [1], [0, 0, 1, 1], [], []>} : vector<8x256xf32>, vector<256x256xf32>, vector<8x256xf32> -> vector<8x256xf32>
    %92 = arith.addf %90, %91 : vector<8x256xf32>
    %93 = math.tanh %92 : vector<8x256xf32>
    %94 = arith.index_cast %c6_i32 : i32 to index
    %c0_48 = arith.constant 0 : index
    %c0_49 = arith.constant 0 : index
    %95 = vector.load %arg7[%94, %c0_48, %c0_49] : memref<8x8x256xf32, #tpu.memory_space<vmem>>, vector<1x8x256xf32>
    %96 = vector.shape_cast %95 : vector<1x8x256xf32> to vector<8x256xf32>
    %97 = vector.shape_cast %93 : vector<8x256xf32> to vector<1x8x256xf32>
    tpu.vector_store %arg7[%94, %c0_48, %c0_49], %97 {strides = array<i32>} : memref<8x8x256xf32, #tpu.memory_space<vmem>>, vector<1x8x256xf32>,
    %c7_i32 = arith.constant 7 : i32
    %98 = arith.index_cast %c7_i32 : i32 to index
    %c0_50 = arith.constant 0 : index
    %c0_51 = arith.constant 0 : index
    %99 = vector.load %arg2[%98, %c0_50, %c0_51] : memref<8x8x16xf32, #tpu.memory_space<vmem>>, vector<1x8x16xf32>
    %100 = vector.shape_cast %99 : vector<1x8x16xf32> to vector<8x16xf32>
    %cst_52 = arith.constant dense<0.000000e+00> : vector<8x256xf32>
    %101 = tpu.matmul %100, %3, %cst_52 {dimension_numbers = #tpu.dot_dimension_numbers<[1], [0], [0], [1], [0, 0, 1, 1], [], []>} : vector<8x16xf32>, vector<16x256xf32>, vector<8x256xf32> -> vector<8x256xf32>
    %102 = vector.broadcast %5 : vector<1x256xf32> to vector<8x256xf32>
    %103 = arith.addf %101, %102 : vector<8x256xf32>
    %cst_53 = arith.constant dense<0.000000e+00> : vector<8x256xf32>
    %104 = tpu.matmul %93, %4, %cst_53 {dimension_numbers = #tpu.dot_dimension_numbers<[1], [0], [0], [1], [0, 0, 1, 1], [], []>} : vector<8x256xf32>, vector<256x256xf32>, vector<8x256xf32> -> vector<8x256xf32>
    %105 = arith.addf %103, %104 : vector<8x256xf32>
    %106 = math.tanh %105 : vector<8x256xf32>
    %107 = arith.index_cast %c7_i32 : i32 to index
    %c0_54 = arith.constant 0 : index
    %c0_55 = arith.constant 0 : index
    %108 = vector.load %arg7[%107, %c0_54, %c0_55] : memref<8x8x256xf32, #tpu.memory_space<vmem>>, vector<1x8x256xf32>
    %109 = vector.shape_cast %108 : vector<1x8x256xf32> to vector<8x256xf32>
    %110 = vector.shape_cast %106 : vector<8x256xf32> to vector<1x8x256xf32>
    tpu.vector_store %arg7[%107, %c0_54, %c0_55], %110 {strides = array<i32>} : memref<8x8x256xf32, #tpu.memory_space<vmem>>, vector<1x8x256xf32>,
    %c8_i32 = arith.constant 8 : i32
    %c0_56 = arith.constant 0 : index
    %c0_57 = arith.constant 0 : index
    %111 = vector.load %arg8[%c0_56, %c0_57] : memref<8x256xf32, #tpu.memory_space<vmem>>, vector<8x256xf32>
    tpu.vector_store %arg8[%c0_56, %c0_57], %106 {strides = array<i32>} : memref<8x256xf32, #tpu.memory_space<vmem>>, vector<8x256xf32>,
    return
  }
  func.func @transform_0(%arg0: i32, %arg1: i32) -> (i32, i32, i32) {
    %c0_i32 = arith.constant 0 : i32
    %c0_i32_0 = arith.constant 0 : i32
    return %arg1, %arg0, %c0_i32 : i32, i32, i32
  }
  func.func @transform_1(%arg0: i32, %arg1: i32) -> (i32, i32) {
    %c0_i32 = arith.constant 0 : i32
    %c0_i32_0 = arith.constant 0 : i32
    %c0_i32_1 = arith.constant 0 : i32
    return %c0_i32, %c0_i32_0 : i32, i32
  }
  func.func @transform_2(%arg0: i32, %arg1: i32) -> (i32, i32) {
    %c0_i32 = arith.constant 0 : i32
    %c0_i32_0 = arith.constant 0 : i32
    %c0_i32_1 = arith.constant 0 : i32
    return %c0_i32, %c0_i32_0 : i32, i32
  }
  func.func @transform_3(%arg0: i32, %arg1: i32) -> (i32, i32) {
    %c0_i32 = arith.constant 0 : i32
    %c0_i32_0 = arith.constant 0 : i32
    %c0_i32_1 = arith.constant 0 : i32
    return %c0_i32, %c0_i32_0 : i32, i32
  }
  func.func @transform_4(%arg0: i32, %arg1: i32) -> (i32, i32) {
    %c0_i32 = arith.constant 0 : i32
    %c0_i32_0 = arith.constant 0 : i32
    return %arg0, %c0_i32 : i32, i32
  }
  func.func @transform_5(%arg0: i32, %arg1: i32) -> (i32, i32, i32) {
    %c0_i32 = arith.constant 0 : i32
    %c0_i32_0 = arith.constant 0 : i32
    return %arg1, %arg0, %c0_i32 : i32, i32, i32
  }
}

module attributes {stable_mosaic.version = 11 : i64} {
  func.func @_fused_rnn_kernel(%arg0: i32, %arg1: i32, %arg2: memref<8x8x16xf32, #tpu.memory_space<vmem>>, %arg3: memref<16x256xf32, #tpu.memory_space<vmem>>, %arg4: memref<1x256xf32, #tpu.memory_space<vmem>>, %arg5: memref<256x256xf32, #tpu.memory_space<vmem>>, %arg6: memref<8x256xf32, #tpu.memory_space<vmem>>, %arg7: memref<8x8x256xf32, #tpu.memory_space<vmem>>, %arg8: memref<8x256xf32, #tpu.memory_space<vmem>>) attributes {dimension_semantics = [#tpu.dimension_semantics<parallel>, #tpu.dimension_semantics<arbitrary>], iteration_bounds = array<i64: 1, 1>, scalar_prefetch = 0 : i64, scratch_operands = 1 : i64, tpu.core_type = #tpu.core_type<tc>, window_params = [{transform_indices = @transform_0, window_bounds = array<i64: 8, 8, 16>}, {pipeline_mode = #tpu.pipeline_mode<synchronous>, transform_indices = @transform_1, window_bounds = array<i64: 16, 256>}, {pipeline_mode = #tpu.pipeline_mode<synchronous>, transform_indices = @transform_2, window_bounds = array<i64: 1, 256>}, {pipeline_mode = #tpu.pipeline_mode<synchronous>, transform_indices = @transform_3, window_bounds = array<i64: 256, 256>}, {transform_indices = @transform_4, window_bounds = array<i64: 8, 256>}, {transform_indices = @transform_5, window_bounds = array<i64: 8, 8, 256>}]} {
    %c0_i32 = arith.constant 0 : i32
    %0 = arith.cmpi eq, %arg1, %c0_i32 : i32
    %1 = arith.extui %0 : i1 to i32
    %c0_i32_0 = arith.constant 0 : i32
    %2 = arith.cmpi ne, %1, %c0_i32_0 : i32
    scf.if %2 {
      %c0_58 = arith.constant 0 : index
      %c0_59 = arith.constant 0 : index
      %112 = vector.load %arg6[%c0_58, %c0_59] : memref<8x256xf32, #tpu.memory_space<vmem>>, vector<8x256xf32>
      %c0_60 = arith.constant 0 : index
      %c0_61 = arith.constant 0 : index
      %113 = vector.load %arg8[%c0_60, %c0_61] : memref<8x256xf32, #tpu.memory_space<vmem>>, vector<8x256xf32>
      tpu.vector_store %arg8[%c0_60, %c0_61], %112 {strides = array<i32>} : memref<8x256xf32, #tpu.memory_space<vmem>>, vector<8x256xf32>,
    } else {
    }
    %c0 = arith.constant 0 : index
    %c0_1 = arith.constant 0 : index
    %3 = vector.load %arg3[%c0, %c0_1] : memref<16x256xf32, #tpu.memory_space<vmem>>, vector<16x256xf32>
    %c0_2 = arith.constant 0 : index
    %c0_3 = arith.constant 0 : index
    %4 = vector.load %arg5[%c0_2, %c0_3] : memref<256x256xf32, #tpu.memory_space<vmem>>, vector<256x256xf32>
    %c0_4 = arith.constant 0 : index
    %c0_5 = arith.constant 0 : index
    %5 = vector.load %arg4[%c0_4, %c0_5] : memref<1x256xf32, #tpu.memory_space<vmem>>, vector<1x256xf32>
    %c0_6 = arith.constant 0 : index
    %c0_7 = arith.constant 0 : index
    %6 = vector.load %arg8[%c0_6, %c0_7] : memref<8x256xf32, #tpu.memory_space<vmem>>, vector<8x256xf32>
    %c0_i32_8 = arith.constant 0 : i32
    %7 = arith.index_cast %c0_i32_8 : i32 to index
    %c0_9 = arith.constant 0 : index
    %c0_10 = arith.constant 0 : index
    %8 = vector.load %arg2[%7, %c0_9, %c0_10] : memref<8x8x16xf32, #tpu.memory_space<vmem>>, vector<1x8x16xf32>
    %9 = vector.shape_cast %8 : vector<1x8x16xf32> to vector<8x16xf32>
    %cst = arith.constant dense<0.000000e+00> : vector<8x256xf32>
    %10 = tpu.matmul %9, %3, %cst {dimension_numbers = #tpu.dot_dimension_numbers<[1], [0], [0], [1], [0, 0, 1, 1], [], []>} : vector<8x16xf32>, vector<16x256xf32>, vector<8x256xf32> -> vector<8x256xf32>
    %11 = vector.broadcast %5 : vector<1x256xf32> to vector<8x256xf32>
    %12 = arith.addf %10, %11 : vector<8x256xf32>
    %cst_11 = arith.constant dense<0.000000e+00> : vector<8x256xf32>
    %13 = tpu.matmul %6, %4, %cst_11 {dimension_numbers = #tpu.dot_dimension_numbers<[1], [0], [0], [1], [0, 0, 1, 1], [], []>} : vector<8x256xf32>, vector<256x256xf32>, vector<8x256xf32> -> vector<8x256xf32>
    %14 = arith.addf %12, %13 : vector<8x256xf32>
    %15 = math.tanh %14 : vector<8x256xf32>
    %16 = arith.index_cast %c0_i32_8 : i32 to index
    %c0_12 = arith.constant 0 : index
    %c0_13 = arith.constant 0 : index
    %17 = vector.load %arg7[%16, %c0_12, %c0_13] : memref<8x8x256xf32, #tpu.memory_space<vmem>>, vector<1x8x256xf32>
    %18 = vector.shape_cast %17 : vector<1x8x256xf32> to vector<8x256xf32>
    %19 = vector.shape_cast %15 : vector<8x256xf32> to vector<1x8x256xf32>
    tpu.vector_store %arg7[%16, %c0_12, %c0_13], %19 {strides = array<i32>} : memref<8x8x256xf32, #tpu.memory_space<vmem>>, vector<1x8x256xf32>,
    %c1_i32 = arith.constant 1 : i32
    %20 = arith.index_cast %c1_i32 : i32 to index
    %c0_14 = arith.constant 0 : index
    %c0_15 = arith.constant 0 : index
    %21 = vector.load %arg2[%20, %c0_14, %c0_15] : memref<8x8x16xf32, #tpu.memory_space<vmem>>, vector<1x8x16xf32>
    %22 = vector.shape_cast %21 : vector<1x8x16xf32> to vector<8x16xf32>
    %cst_16 = arith.constant dense<0.000000e+00> : vector<8x256xf32>
    %23 = tpu.matmul %22, %3, %cst_16 {dimension_numbers = #tpu.dot_dimension_numbers<[1], [0], [0], [1], [0, 0, 1, 1], [], []>} : vector<8x16xf32>, vector<16x256xf32>, vector<8x256xf32> -> vector<8x256xf32>
    %24 = vector.broadcast %5 : vector<1x256xf32> to vector<8x256xf32>
    %25 = arith.addf %23, %24 : vector<8x256xf32>
    %cst_17 = arith.constant dense<0.000000e+00> : vector<8x256xf32>
    %26 = tpu.matmul %15, %4, %cst_17 {dimension_numbers = #tpu.dot_dimension_numbers<[1], [0], [0], [1], [0, 0, 1, 1], [], []>} : vector<8x256xf32>, vector<256x256xf32>, vector<8x256xf32> -> vector<8x256xf32>
    %27 = arith.addf %25, %26 : vector<8x256xf32>
    %28 = math.tanh %27 : vector<8x256xf32>
    %29 = arith.index_cast %c1_i32 : i32 to index
    %c0_18 = arith.constant 0 : index
    %c0_19 = arith.constant 0 : index
    %30 = vector.load %arg7[%29, %c0_18, %c0_19] : memref<8x8x256xf32, #tpu.memory_space<vmem>>, vector<1x8x256xf32>
    %31 = vector.shape_cast %30 : vector<1x8x256xf32> to vector<8x256xf32>
    %32 = vector.shape_cast %28 : vector<8x256xf32> to vector<1x8x256xf32>
    tpu.vector_store %arg7[%29, %c0_18, %c0_19], %32 {strides = array<i32>} : memref<8x8x256xf32, #tpu.memory_space<vmem>>, vector<1x8x256xf32>,
    %c2_i32 = arith.constant 2 : i32
    %33 = arith.index_cast %c2_i32 : i32 to index
    %c0_20 = arith.constant 0 : index
    %c0_21 = arith.constant 0 : index
    %34 = vector.load %arg2[%33, %c0_20, %c0_21] : memref<8x8x16xf32, #tpu.memory_space<vmem>>, vector<1x8x16xf32>
    %35 = vector.shape_cast %34 : vector<1x8x16xf32> to vector<8x16xf32>
    %cst_22 = arith.constant dense<0.000000e+00> : vector<8x256xf32>
    %36 = tpu.matmul %35, %3, %cst_22 {dimension_numbers = #tpu.dot_dimension_numbers<[1], [0], [0], [1], [0, 0, 1, 1], [], []>} : vector<8x16xf32>, vector<16x256xf32>, vector<8x256xf32> -> vector<8x256xf32>
    %37 = vector.broadcast %5 : vector<1x256xf32> to vector<8x256xf32>
    %38 = arith.addf %36, %37 : vector<8x256xf32>
    %cst_23 = arith.constant dense<0.000000e+00> : vector<8x256xf32>
    %39 = tpu.matmul %28, %4, %cst_23 {dimension_numbers = #tpu.dot_dimension_numbers<[1], [0], [0], [1], [0, 0, 1, 1], [], []>} : vector<8x256xf32>, vector<256x256xf32>, vector<8x256xf32> -> vector<8x256xf32>
    %40 = arith.addf %38, %39 : vector<8x256xf32>
    %41 = math.tanh %40 : vector<8x256xf32>
    %42 = arith.index_cast %c2_i32 : i32 to index
    %c0_24 = arith.constant 0 : index
    %c0_25 = arith.constant 0 : index
    %43 = vector.load %arg7[%42, %c0_24, %c0_25] : memref<8x8x256xf32, #tpu.memory_space<vmem>>, vector<1x8x256xf32>
    %44 = vector.shape_cast %43 : vector<1x8x256xf32> to vector<8x256xf32>
    %45 = vector.shape_cast %41 : vector<8x256xf32> to vector<1x8x256xf32>
    tpu.vector_store %arg7[%42, %c0_24, %c0_25], %45 {strides = array<i32>} : memref<8x8x256xf32, #tpu.memory_space<vmem>>, vector<1x8x256xf32>,
    %c3_i32 = arith.constant 3 : i32
    %46 = arith.index_cast %c3_i32 : i32 to index
    %c0_26 = arith.constant 0 : index
    %c0_27 = arith.constant 0 : index
    %47 = vector.load %arg2[%46, %c0_26, %c0_27] : memref<8x8x16xf32, #tpu.memory_space<vmem>>, vector<1x8x16xf32>
    %48 = vector.shape_cast %47 : vector<1x8x16xf32> to vector<8x16xf32>
    %cst_28 = arith.constant dense<0.000000e+00> : vector<8x256xf32>
    %49 = tpu.matmul %48, %3, %cst_28 {dimension_numbers = #tpu.dot_dimension_numbers<[1], [0], [0], [1], [0, 0, 1, 1], [], []>} : vector<8x16xf32>, vector<16x256xf32>, vector<8x256xf32> -> vector<8x256xf32>
    %50 = vector.broadcast %5 : vector<1x256xf32> to vector<8x256xf32>
    %51 = arith.addf %49, %50 : vector<8x256xf32>
    %cst_29 = arith.constant dense<0.000000e+00> : vector<8x256xf32>
    %52 = tpu.matmul %41, %4, %cst_29 {dimension_numbers = #tpu.dot_dimension_numbers<[1], [0], [0], [1], [0, 0, 1, 1], [], []>} : vector<8x256xf32>, vector<256x256xf32>, vector<8x256xf32> -> vector<8x256xf32>
    %53 = arith.addf %51, %52 : vector<8x256xf32>
    %54 = math.tanh %53 : vector<8x256xf32>
    %55 = arith.index_cast %c3_i32 : i32 to index
    %c0_30 = arith.constant 0 : index
    %c0_31 = arith.constant 0 : index
    %56 = vector.load %arg7[%55, %c0_30, %c0_31] : memref<8x8x256xf32, #tpu.memory_space<vmem>>, vector<1x8x256xf32>
    %57 = vector.shape_cast %56 : vector<1x8x256xf32> to vector<8x256xf32>
    %58 = vector.shape_cast %54 : vector<8x256xf32> to vector<1x8x256xf32>
    tpu.vector_store %arg7[%55, %c0_30, %c0_31], %58 {strides = array<i32>} : memref<8x8x256xf32, #tpu.memory_space<vmem>>, vector<1x8x256xf32>,
    %c4_i32 = arith.constant 4 : i32
    %59 = arith.index_cast %c4_i32 : i32 to index
    %c0_32 = arith.constant 0 : index
    %c0_33 = arith.constant 0 : index
    %60 = vector.load %arg2[%59, %c0_32, %c0_33] : memref<8x8x16xf32, #tpu.memory_space<vmem>>, vector<1x8x16xf32>
    %61 = vector.shape_cast %60 : vector<1x8x16xf32> to vector<8x16xf32>
    %cst_34 = arith.constant dense<0.000000e+00> : vector<8x256xf32>
    %62 = tpu.matmul %61, %3, %cst_34 {dimension_numbers = #tpu.dot_dimension_numbers<[1], [0], [0], [1], [0, 0, 1, 1], [], []>} : vector<8x16xf32>, vector<16x256xf32>, vector<8x256xf32> -> vector<8x256xf32>
    %63 = vector.broadcast %5 : vector<1x256xf32> to vector<8x256xf32>
    %64 = arith.addf %62, %63 : vector<8x256xf32>
    %cst_35 = arith.constant dense<0.000000e+00> : vector<8x256xf32>
    %65 = tpu.matmul %54, %4, %cst_35 {dimension_numbers = #tpu.dot_dimension_numbers<[1], [0], [0], [1], [0, 0, 1, 1], [], []>} : vector<8x256xf32>, vector<256x256xf32>, vector<8x256xf32> -> vector<8x256xf32>
    %66 = arith.addf %64, %65 : vector<8x256xf32>
    %67 = math.tanh %66 : vector<8x256xf32>
    %68 = arith.index_cast %c4_i32 : i32 to index
    %c0_36 = arith.constant 0 : index
    %c0_37 = arith.constant 0 : index
    %69 = vector.load %arg7[%68, %c0_36, %c0_37] : memref<8x8x256xf32, #tpu.memory_space<vmem>>, vector<1x8x256xf32>
    %70 = vector.shape_cast %69 : vector<1x8x256xf32> to vector<8x256xf32>
    %71 = vector.shape_cast %67 : vector<8x256xf32> to vector<1x8x256xf32>
    tpu.vector_store %arg7[%68, %c0_36, %c0_37], %71 {strides = array<i32>} : memref<8x8x256xf32, #tpu.memory_space<vmem>>, vector<1x8x256xf32>,
    %c5_i32 = arith.constant 5 : i32
    %72 = arith.index_cast %c5_i32 : i32 to index
    %c0_38 = arith.constant 0 : index
    %c0_39 = arith.constant 0 : index
    %73 = vector.load %arg2[%72, %c0_38, %c0_39] : memref<8x8x16xf32, #tpu.memory_space<vmem>>, vector<1x8x16xf32>
    %74 = vector.shape_cast %73 : vector<1x8x16xf32> to vector<8x16xf32>
    %cst_40 = arith.constant dense<0.000000e+00> : vector<8x256xf32>
    %75 = tpu.matmul %74, %3, %cst_40 {dimension_numbers = #tpu.dot_dimension_numbers<[1], [0], [0], [1], [0, 0, 1, 1], [], []>} : vector<8x16xf32>, vector<16x256xf32>, vector<8x256xf32> -> vector<8x256xf32>
    %76 = vector.broadcast %5 : vector<1x256xf32> to vector<8x256xf32>
    %77 = arith.addf %75, %76 : vector<8x256xf32>
    %cst_41 = arith.constant dense<0.000000e+00> : vector<8x256xf32>
    %78 = tpu.matmul %67, %4, %cst_41 {dimension_numbers = #tpu.dot_dimension_numbers<[1], [0], [0], [1], [0, 0, 1, 1], [], []>} : vector<8x256xf32>, vector<256x256xf32>, vector<8x256xf32> -> vector<8x256xf32>
    %79 = arith.addf %77, %78 : vector<8x256xf32>
    %80 = math.tanh %79 : vector<8x256xf32>
    %81 = arith.index_cast %c5_i32 : i32 to index
    %c0_42 = arith.constant 0 : index
    %c0_43 = arith.constant 0 : index
    %82 = vector.load %arg7[%81, %c0_42, %c0_43] : memref<8x8x256xf32, #tpu.memory_space<vmem>>, vector<1x8x256xf32>
    %83 = vector.shape_cast %82 : vector<1x8x256xf32> to vector<8x256xf32>
    %84 = vector.shape_cast %80 : vector<8x256xf32> to vector<1x8x256xf32>
    tpu.vector_store %arg7[%81, %c0_42, %c0_43], %84 {strides = array<i32>} : memref<8x8x256xf32, #tpu.memory_space<vmem>>, vector<1x8x256xf32>,
    %c6_i32 = arith.constant 6 : i32
    %85 = arith.index_cast %c6_i32 : i32 to index
    %c0_44 = arith.constant 0 : index
    %c0_45 = arith.constant 0 : index
    %86 = vector.load %arg2[%85, %c0_44, %c0_45] : memref<8x8x16xf32, #tpu.memory_space<vmem>>, vector<1x8x16xf32>
    %87 = vector.shape_cast %86 : vector<1x8x16xf32> to vector<8x16xf32>
    %cst_46 = arith.constant dense<0.000000e+00> : vector<8x256xf32>
    %88 = tpu.matmul %87, %3, %cst_46 {dimension_numbers = #tpu.dot_dimension_numbers<[1], [0], [0], [1], [0, 0, 1, 1], [], []>} : vector<8x16xf32>, vector<16x256xf32>, vector<8x256xf32> -> vector<8x256xf32>
    %89 = vector.broadcast %5 : vector<1x256xf32> to vector<8x256xf32>
    %90 = arith.addf %88, %89 : vector<8x256xf32>
    %cst_47 = arith.constant dense<0.000000e+00> : vector<8x256xf32>
    %91 = tpu.matmul %80, %4, %cst_47 {dimension_numbers = #tpu.dot_dimension_numbers<[1], [0], [0], [1], [0, 0, 1, 1], [], []>} : vector<8x256xf32>, vector<256x256xf32>, vector<8x256xf32> -> vector<8x256xf32>
    %92 = arith.addf %90, %91 : vector<8x256xf32>
    %93 = math.tanh %92 : vector<8x256xf32>
    %94 = arith.index_cast %c6_i32 : i32 to index
    %c0_48 = arith.constant 0 : index
    %c0_49 = arith.constant 0 : index
    %95 = vector.load %arg7[%94, %c0_48, %c0_49] : memref<8x8x256xf32, #tpu.memory_space<vmem>>, vector<1x8x256xf32>
    %96 = vector.shape_cast %95 : vector<1x8x256xf32> to vector<8x256xf32>
    %97 = vector.shape_cast %93 : vector<8x256xf32> to vector<1x8x256xf32>
    tpu.vector_store %arg7[%94, %c0_48, %c0_49], %97 {strides = array<i32>} : memref<8x8x256xf32, #tpu.memory_space<vmem>>, vector<1x8x256xf32>,
    %c7_i32 = arith.constant 7 : i32
    %98 = arith.index_cast %c7_i32 : i32 to index
    %c0_50 = arith.constant 0 : index
    %c0_51 = arith.constant 0 : index
    %99 = vector.load %arg2[%98, %c0_50, %c0_51] : memref<8x8x16xf32, #tpu.memory_space<vmem>>, vector<1x8x16xf32>
    %100 = vector.shape_cast %99 : vector<1x8x16xf32> to vector<8x16xf32>
    %cst_52 = arith.constant dense<0.000000e+00> : vector<8x256xf32>
    %101 = tpu.matmul %100, %3, %cst_52 {dimension_numbers = #tpu.dot_dimension_numbers<[1], [0], [0], [1], [0, 0, 1, 1], [], []>} : vector<8x16xf32>, vector<16x256xf32>, vector<8x256xf32> -> vector<8x256xf32>
    %102 = vector.broadcast %5 : vector<1x256xf32> to vector<8x256xf32>
    %103 = arith.addf %101, %102 : vector<8x256xf32>
    %cst_53 = arith.constant dense<0.000000e+00> : vector<8x256xf32>
    %104 = tpu.matmul %93, %4, %cst_53 {dimension_numbers = #tpu.dot_dimension_numbers<[1], [0], [0], [1], [0, 0, 1, 1], [], []>} : vector<8x256xf32>, vector<256x256xf32>, vector<8x256xf32> -> vector<8x256xf32>
    %105 = arith.addf %103, %104 : vector<8x256xf32>
    %106 = math.tanh %105 : vector<8x256xf32>
    %107 = arith.index_cast %c7_i32 : i32 to index
    %c0_54 = arith.constant 0 : index
    %c0_55 = arith.constant 0 : index
    %108 = vector.load %arg7[%107, %c0_54, %c0_55] : memref<8x8x256xf32, #tpu.memory_space<vmem>>, vector<1x8x256xf32>
    %109 = vector.shape_cast %108 : vector<1x8x256xf32> to vector<8x256xf32>
    %110 = vector.shape_cast %106 : vector<8x256xf32> to vector<1x8x256xf32>
    tpu.vector_store %arg7[%107, %c0_54, %c0_55], %110 {strides = array<i32>} : memref<8x8x256xf32, #tpu.memory_space<vmem>>, vector<1x8x256xf32>,
    %c8_i32 = arith.constant 8 : i32
    %c0_56 = arith.constant 0 : index
    %c0_57 = arith.constant 0 : index
    %111 = vector.load %arg8[%c0_56, %c0_57] : memref<8x256xf32, #tpu.memory_space<vmem>>, vector<8x256xf32>
    tpu.vector_store %arg8[%c0_56, %c0_57], %106 {strides = array<i32>} : memref<8x256xf32, #tpu.memory_space<vmem>>, vector<8x256xf32>,
    return
  }
  func.func @transform_0(%arg0: i32, %arg1: i32) -> (i32, i32, i32) {
    %c0_i32 = arith.constant 0 : i32
    %c0_i32_0 = arith.constant 0 : i32
    return %arg1, %arg0, %c0_i32 : i32, i32, i32
  }
  func.func @transform_1(%arg0: i32, %arg1: i32) -> (i32, i32) {
    %c0_i32 = arith.constant 0 : i32
    %c0_i32_0 = arith.constant 0 : i32
    %c0_i32_1 = arith.constant 0 : i32
    return %c0_i32, %c0_i32_0 : i32, i32
  }
  func.func @transform_2(%arg0: i32, %arg1: i32) -> (i32, i32) {
    %c0_i32 = arith.constant 0 : i32
    %c0_i32_0 = arith.constant 0 : i32
    %c0_i32_1 = arith.constant 0 : i32
    return %c0_i32, %c0_i32_0 : i32, i32
  }
  func.func @transform_3(%arg0: i32, %arg1: i32) -> (i32, i32) {
    %c0_i32 = arith.constant 0 : i32
    %c0_i32_0 = arith.constant 0 : i32
    %c0_i32_1 = arith.constant 0 : i32
    return %c0_i32, %c0_i32_0 : i32, i32
  }
  func.func @transform_4(%arg0: i32, %arg1: i32) -> (i32, i32) {
    %c0_i32 = arith.constant 0 : i32
    %c0_i32_0 = arith.constant 0 : i32
    return %arg0, %c0_i32 : i32, i32
  }
  func.func @transform_5(%arg0: i32, %arg1: i32) -> (i32, i32, i32) {
    %c0_i32 = arith.constant 0 : i32
    %c0_i32_0 = arith.constant 0 : i32
    return %arg1, %arg0, %c0_i32 : i32, i32, i32
  }
}

</mosaic_0001>

<bundles_post_ra>
// kernel: tpu_custom_call.1
= control target key start
LH: loop header
LB: loop body
LE: loop exit
PB: predicated region body
PF: predicated region fallthrough
CT: control target
= control target key end

     0   :  { %10 = vsyncpa [#allocation4], 0  ;;  %s2692_s0 = inlined_call_operand.hbm [shape: f32[8,8,16], index: 0, kind: input, shape index: {}]   ;;  %s2693_s1 = inlined_call_operand.hbm [shape: f32[16,256], index: 1, kind: input, shape index: {}]   ;;  %s2694_s2 = inlined_call_operand.hbm [shape: f32[1,256], index: 2, kind: input, shape index: {}]   ;;  %s2695_s3 = inlined_call_operand.hbm [shape: f32[256,256], index: 3, kind: input, shape index: {}]   ;;  %s2696_s4 = inlined_call_operand.hbm [shape: f32[8,256], index: 4, kind: input, shape index: {}]   ;;  %s2697_s5 = inlined_call_operand.hbm [shape: f32[8,8,256], index: 5, kind: output, shape index: {}]  }
   0x1   :  { %11 = vsyncpa [#allocation7], 0 }
   0x2   :  { %12 = vsyncpa [#allocation10], 0 }
   0x3   :  { %13 = vsyncpa [#allocation5], 0  ;;  %s2194_s18 = smov [#allocation6]   ;;  %s2054_s22 = scalar_lea.hbm %s2693_s1, 512 }
   0x4   :  { %s31_s19 = sshll.u32 %s2194_s18, 4  ;;  %p2055_p0 = scmp.ne.s32.totalorder %s2693_s1, %s2054_s22  ;;  %s32_s19 = int_to_ptr.vmem [resolvable:$true] %s31_s19 }
   0x5   :  { %p2058_p1 = scmp.lt.u32.totalorder %s2054_s22, %s2693_s1 }
   0x7   :  { %p2060_p2 = pnand %p2058_p1, %p2055_p0 }
   0x9   :  { %2063 = shalt.err (!%p2060_p2)
}
   0xa   :  { %s2064_s27 = scalar_lea.vmem %s32_s19, 512  ;;  %p2069_p4 = scmp.lt.s32.totalorder %s32_s19, %s32_s19 }
   0xb   :  { %p2065_p3 = scmp.ne.s32.totalorder %s32_s19, %s2064_s27  ;;  %p2070_p5 = scmp.lt.s32.totalorder %s2064_s27, %s2064_s27 }
   0xd   :  { %p2071_p6 = por %p2070_p5, %p2069_p4 }
   0xf   :  { %p2072_p7 = pnand %p2071_p6, %p2065_p3 }
  0x11   :  { %2075 = shalt.err (!%p2072_p7)
}
  0x12   :  { %s2195_s28 = smov 256   ;;  %s2196_s29 = smov 16  }
  0x13   :  { %37 = dma.hbm_to_vmem [thread:$0]  %s2693_s1, 512, %s32_s19, [#allocation7], %s2195_s28, %s2195_s28, %s2196_s29  }
  0x14   :  { %s2197_s7 = smov [#allocation9]   ;;  %s2198_s9 = smov [#allocation3]  }
  0x15   :  { %s53_s8 = sshll.u32 %s2197_s7, 4  ;;  %s19_s10 = sshll.u32 %s2198_s9, 4  ;;  %s54_s8 = int_to_ptr.vmem [resolvable:$true] %s53_s8  ;;  %s20_s10 = int_to_ptr.vmem [resolvable:$true] %s19_s10 }
  0x16   :  { %s2076_s13 = scalar_lea.hbm %s2695_s3, 8192 }
  0x17   :  { %p2077_p8 = scmp.ne.s32.totalorder %s2695_s3, %s2076_s13  ;;  %p2080_p9 = scmp.lt.u32.totalorder %s2076_s13, %s2695_s3 }
  0x19   :  { %p2082_p10 = pnand %p2080_p9, %p2077_p8 }
  0x1b   :  { %2085 = shalt.err (!%p2082_p10)
}
  0x1c   :  { %s2086_s1 = scalar_lea.vmem %s54_s8, 8192  ;;  %p2091_p12 = scmp.lt.s32.totalorder %s54_s8, %s54_s8 }
  0x1d   :  { %p2087_p11 = scmp.ne.s32.totalorder %s54_s8, %s2086_s1  ;;  %p2092_p13 = scmp.lt.s32.totalorder %s2086_s1, %s2086_s1 }
  0x1f   :  { %p2093_p0 = por %p2092_p13, %p2091_p12 }
  0x21   :  { %p2094_p1 = pnand %p2093_p0, %p2087_p11 }
  0x23   :  { %2097 = shalt.err (!%p2094_p1)
}
  0x24   :  { %59 = dma.hbm_to_vmem [thread:$0]  %s2695_s3, 8192, %s54_s8, [#allocation10], %s2195_s28, %s2195_s28, %s2196_s29  }
  0x25   :  { %s2098_s22 = scalar_lea.hbm %s2692_s0, 1024 }
  0x26   :  { %p2099_p2 = scmp.ne.s32.totalorder %s2692_s0, %s2098_s22  ;;  %p2102_p3 = scmp.lt.u32.totalorder %s2098_s22, %s2692_s0 }
  0x28   :  { %p2104_p4 = pnand %p2102_p3, %p2099_p2 }
  0x2a   :  { %2107 = shalt.err (!%p2104_p4)
}
  0x2b   :  { %s2108_s27 = scalar_lea.vmem %s20_s10, 1024  ;;  %p2113_p6 = scmp.lt.s32.totalorder %s20_s10, %s20_s10 }
  0x2c   :  { %p2109_p5 = scmp.ne.s32.totalorder %s20_s10, %s2108_s27  ;;  %p2114_p7 = scmp.lt.s32.totalorder %s2108_s27, %s2108_s27 }
  0x2e   :  { %p2115_p8 = por %p2114_p7, %p2113_p6 }
  0x30   :  { %p2116_p9 = pnand %p2115_p8, %p2109_p5 }
  0x32   :  { %2119 = shalt.err (!%p2116_p9)
}
  0x33   :  { %s2199_s3 = smov 128   ;;  %s2200_s30 = smov 8  }
  0x34   :  { %25 = dma.hbm_to_vmem [thread:$0]  %s2692_s0, 1024, %s20_s10, [#allocation4], %s2199_s3, %s2199_s3, %s2200_s30  }
  0x35   :  { %s2201_s8 = smov [#allocation8]   ;;  %s2202_s11 = smov [#allocation11]  }
  0x36   :  { %s44_s9 = sshll.u32 %s2201_s8, 4  ;;  %s66_s12 = sshll.u32 %s2202_s11, 4  ;;  %s45_s9 = int_to_ptr.vmem [resolvable:$true] %s44_s9  ;;  %s67_s12 = int_to_ptr.vmem [resolvable:$true] %s66_s12 }
  0x37   :  { %s2120_s15 = scalar_lea.hbm %s2694_s2, 32 }
  0x38   :  { %p2121_p10 = scmp.ne.s32.totalorder %s2694_s2, %s2120_s15  ;;  %p2124_p11 = scmp.lt.u32.totalorder %s2120_s15, %s2694_s2 }
  0x3a   :  { %p2126_p12 = pnand %p2124_p11, %p2121_p10 }
  0x3c   :  { %2129 = shalt.err (!%p2126_p12)
}
  0x3d   :  { %s2130_s0 = scalar_lea.vmem %s45_s9, 32  ;;  %p2135_p0 = scmp.lt.s32.totalorder %s45_s9, %s45_s9 }
  0x3e   :  { %p2131_p13 = scmp.ne.s32.totalorder %s45_s9, %s2130_s0  ;;  %p2136_p1 = scmp.lt.s32.totalorder %s2130_s0, %s2130_s0 }
  0x40   :  { %p2137_p2 = por %p2136_p1, %p2135_p0 }
  0x42   :  { %p2138_p3 = pnand %p2137_p2, %p2131_p13 }
  0x44   :  { %2141 = shalt.err (!%p2138_p3)
}
  0x45   :  { %47 = dma.hbm_to_vmem [thread:$0]  %s2694_s2, 32, %s45_s9, [#allocation7]  }
  0x46   :  { %s2142_s22 = scalar_lea.hbm %s2696_s4, 256 }
  0x47   :  { %p2143_p4 = scmp.ne.s32.totalorder %s2696_s4, %s2142_s22  ;;  %p2146_p5 = scmp.lt.u32.totalorder %s2142_s22, %s2696_s4 }
  0x49   :  { %p2148_p6 = pnand %p2146_p5, %p2143_p4 }
  0x4b   :  { %2151 = shalt.err (!%p2148_p6)
}
  0x4c   :  { %s2152_s27 = scalar_lea.vmem %s67_s12, 256  ;;  %p2157_p8 = scmp.lt.s32.totalorder %s67_s12, %s67_s12 }
  0x4d   :  { %p2153_p7 = scmp.ne.s32.totalorder %s67_s12, %s2152_s27  ;;  %p2158_p9 = scmp.lt.s32.totalorder %s2152_s27, %s2152_s27 }
  0x4f   :  { %p2159_p10 = por %p2158_p9, %p2157_p8 }
  0x51   :  { %p2160_p11 = pnand %p2159_p10, %p2153_p7 }
  0x53   :  { %2163 = shalt.err (!%p2160_p11)
}
  0x54   :  { %69 = dma.hbm_to_vmem [thread:$0]  %s2696_s4, 256, %s67_s12, [#allocation10]  }
  0x55   :  { %2186 = dma.done.wait [#allocation4], 1024  }
  0x56   :  { %2187 = vsyncadd [#allocation4], 4294966272 }
  0x57   :  { %2188 = dma.done.wait [#allocation7], 544  }
  0x58   :  { %2189 = vsyncadd [#allocation7], 4294966752 }
  0x59   :  { %2190 = dma.done.wait [#allocation10], 8448  }
  0x5a   :  { %2191 = vsyncadd [#allocation10], 4294958848  ;;  %v2203_v0 = vmov 0.0   ;;  %v94_v1 = vld [vmem:[#allocation6 + $0x8] sm:$0xff]  ;;  %v96_v2 = vld [vmem:[#allocation6 + $0x18] sm:$0xff]  ;;  %vm176_vm0 = vcmask 130048  }
  0x5b   :  { %244 = vmatprep.mubr.f32.mxu0 %v2203_v0  ;;  %397 = vmatprep.mubr.f32.mxu1 %v2203_v0  ;;  %v93_v3 = vld [vmem:[#allocation6] sm:$0xff]  ;;  %v2303_v4 = vpack.c.bf16 %v96_v2, %v94_v1  ;;  %v95_v5 = vld [vmem:[#allocation6 + $0x10] sm:$0xff]  ;;  %v329_v46 = vld [vmem:[#allocation3 + $0x8] sm:$0xff]  ;;  %s2204_s4 = smov [#allocation12]  }
  0x5c   :  { %v98_v6 = vld [vmem:[#allocation9 + $0x8] sm:$0xff]  ;;  %v100_v7 = vld [vmem:[#allocation9 + $0x18] sm:$0xff]  ;;  %v2305_v8 = vpack.c.bf16 %v95_v5, %v93_v3  ;;  %v97_v10 = vld [vmem:[#allocation9] sm:$0xff]  ;;  %s1413_s30 = sshll.u32 %s2204_s4, 4  ;;  %s1414_s30 = int_to_ptr.vmem [resolvable:$true] %s1413_s30 }
  0x5d   :  { %v2307_v9 = vpack.c.bf16 %v100_v7, %v98_v6  ;;  %v99_v11 = vld [vmem:[#allocation9 + $0x10] sm:$0xff]  ;;  %1436 = vmatprep.subr.bf16.mxu0 %v2303_v4  ;;  %v102_v12 = vld [vmem:[#allocation9 + $0x28] sm:$0xff]  ;;  %v104_v13 = vld [vmem:[#allocation9 + $0x38] sm:$0xff]  ;;  %1504 = vmatprep.subr.bf16.mxu1 %v2303_v4  ;;  %s2164_s6 = scalar_lea.vmem %s1414_s30, 2048  ;;  %p2169_p13 = scmp.lt.s32.totalorder %s1414_s30, %s1414_s30 }
  0x5e   :  { %1438 = vmatpush1.bf16.msra.mxu0 %v2305_v8  ;;  %v164_v14 = vld [vmem:[#allocation3] sm:$0xff]  ;;  %v2312_v15 = vpack.c.bf16 %v99_v11, %v97_v10  ;;  %1506 = vmatpush1.bf16.msra.mxu1 %v2305_v8  ;;  %v2316_v16 = vpack.c.bf16 %v104_v13, %v102_v12  ;;  %v103_v18 = vld [vmem:[#allocation9 + $0x30] sm:$0xff]  ;;  %v106_v19 = vld [vmem:[#allocation9 + $0x48] sm:$0xff]  ;;  %p2165_p12 = scmp.ne.s32.totalorder %s1414_s30, %s2164_s6  ;;  %p2170_p0 = scmp.lt.s32.totalorder %s2164_s6, %s2164_s6 }
  0x5f   :  { %1440 = vmatprep.subr.bf16.mxu0 %v2307_v9  ;;  %v101_v17 = vld [vmem:[#allocation9 + $0x20] sm:$0xff]  ;;  %1508 = vmatprep.subr.bf16.mxu1 %v2307_v9  ;;  %v108_v20 = vld [vmem:[#allocation9 + $0x58] sm:$0xff]  ;;  %v107_v24 = vld [vmem:[#allocation9 + $0x50] sm:$0xff] }
  0x60   :  { %v2321_v21 = vpack.c.bf16 %v103_v18, %v101_v17  ;;  %v2324_v22 = vpack.c.bf16 %v108_v20, %v106_v19  ;;  %v105_v23 = vld [vmem:[#allocation9 + $0x40] sm:$0xff]  ;;  %v110_v25 = vld [vmem:[#allocation9 + $0x68] sm:$0xff]  ;;  %v112_v26 = vld [vmem:[#allocation9 + $0x78] sm:$0xff]  ;;  %p2171_p1 = por %p2170_p0, %p2169_p13 }
  0x61   :  { %1427 = vmatmul.mubr.msk.f32.vlgmr.msra.gmra.mrb[0].mxu0 %vm176_vm0, %v164_v14  ;;  %v2327_v27 = vpack.c.bf16 %v107_v24, %v105_v23  ;;  %v2330_v28 = vpack.c.bf16 %v112_v26, %v110_v25  ;;  %v109_v29 = vld [vmem:[#allocation9 + $0x60] sm:$0xff]  ;;  %v111_v30 = vld [vmem:[#allocation9 + $0x70] sm:$0xff]  ;;  %v114_v31 = vld [vmem:[#allocation9 + $0x88] sm:$0xff]  ;;  %1428 = vmatmul.mubr.msk.f32.vlgmr.msra.gmra.mrb[0].mxu1 %vm176_vm0, %v329_v46 }
  0x62   :  { %1442 = vmatpush1.bf16.msra.mxu0 %v2312_v15  ;;  %v116_v32 = vld [vmem:[#allocation9 + $0x98] sm:$0xff]  ;;  %v2333_v33 = vpack.c.bf16 %v111_v30, %v109_v29  ;;  %v113_v35 = vld [vmem:[#allocation9 + $0x80] sm:$0xff]  ;;  %v115_v36 = vld [vmem:[#allocation9 + $0x90] sm:$0xff]  ;;  %1510 = vmatpush1.bf16.msra.mxu1 %v2312_v15  ;;  %p2172_p2 = pnand %p2171_p1, %p2165_p12 }
  0x63   :  { %1444 = vmatprep.subr.bf16.mxu0 %v2316_v16  ;;  %v2336_v34 = vpack.c.bf16 %v116_v32, %v114_v31  ;;  %v118_v37 = vld [vmem:[#allocation9 + $0xa8] sm:$0xff]  ;;  %v120_v38 = vld [vmem:[#allocation9 + $0xb8] sm:$0xff]  ;;  %v2339_v39 = vpack.c.bf16 %v115_v36, %v113_v35  ;;  %v117_v41 = vld [vmem:[#allocation9 + $0xa0] sm:$0xff]  ;;  %1512 = vmatprep.subr.bf16.mxu1 %v2316_v16 }
  0x64   :  { %v2342_v40 = vpack.c.bf16 %v120_v38, %v118_v37  ;;  %v119_v42 = vld [vmem:[#allocation9 + $0xb0] sm:$0xff]  ;;  %v122_v43 = vld [vmem:[#allocation9 + $0xc8] sm:$0xff]  ;;  %v124_v44 = vld [vmem:[#allocation9 + $0xd8] sm:$0xff] }
  0x65   :  { %v90_v45 = vld [vmem:[#allocation11 + $0x8] sm:$0xff]  ;;  %v2345_v47 = vpack.c.bf16 %v119_v42, %v117_v41  ;;  %v2348_v48 = vpack.c.bf16 %v124_v44, %v122_v43  ;;  %v121_v49 = vld [vmem:[#allocation9 + $0xc0] sm:$0xff]  ;;  %v123_v50 = vld [vmem:[#allocation9 + $0xd0] sm:$0xff] }
  0x66   :  { %1446 = vmatpush1.bf16.msra.mxu0 %v2321_v21  ;;  %315 = vmatprep.mubr.f32.mxu0 %v90_v45  ;;  %v126_v51 = vld [vmem:[#allocation9 + $0xe8] sm:$0xff]  ;;  %v128_v52 = vld [vmem:[#allocation9 + $0xf8] sm:$0xff]  ;;  %v2354_v53 = vpack.c.bf16 %v123_v50, %v121_v49  ;;  %v125_v55 = vld [vmem:[#allocation9 + $0xe0] sm:$0xff] }
  0x67   :  { %1448 = vmatprep.subr.bf16.mxu0 %v2324_v22  ;;  %v2357_v54 = vpack.c.bf16 %v128_v52, %v126_v51  ;;  %v127_v56 = vld [vmem:[#allocation9 + $0xf0] sm:$0xff]  ;;  %v130_v57 = vld [vmem:[#allocation9 + $0x108] sm:$0xff]  ;;  %v132_v58 = vld [vmem:[#allocation9 + $0x118] sm:$0xff]  ;;  %1514 = vmatpush1.bf16.msra.mxu1 %v2321_v21 }
  0x68   :  { %1516 = vmatprep.subr.bf16.mxu1 %v2324_v22  ;;  %v2362_v59 = vpack.c.bf16 %v127_v56, %v125_v55  ;;  %v2365_v60 = vpack.c.bf16 %v132_v58, %v130_v57  ;;  %v129_v61 = vld [vmem:[#allocation9 + $0x100] sm:$0xff]  ;;  %v131_v62 = vld [vmem:[#allocation9 + $0x110] sm:$0xff]  ;;  %v134_v63 = vld [vmem:[#allocation9 + $0x128] sm:$0xff] }
  0x69   :  { %v136_v1 = vld [vmem:[#allocation9 + $0x138] sm:$0xff]  ;;  %v2370_v2 = vpack.c.bf16 %v131_v62, %v129_v61  ;;  %v133_v5 = vld [vmem:[#allocation9 + $0x120] sm:$0xff]  ;;  %v135_v6 = vld [vmem:[#allocation9 + $0x130] sm:$0xff] }
  0x6a   :  { %1450 = vmatpush1.bf16.msra.mxu0 %v2327_v27  ;;  %v2373_v3 = vpack.c.bf16 %v136_v1, %v134_v63  ;;  %v138_v7 = vld [vmem:[#allocation9 + $0x148] sm:$0xff]  ;;  %v140_v10 = vld [vmem:[#allocation9 + $0x158] sm:$0xff]  ;;  %v2378_v11 = vpack.c.bf16 %v135_v6, %v133_v5  ;;  %v137_v13 = vld [vmem:[#allocation9 + $0x140] sm:$0xff]  ;;  %v166_v1 = vlaneseq }
  0x6b   :  { %1452 = vmatprep.subr.bf16.mxu0 %v2330_v28  ;;  %1518 = vmatpush1.bf16.msra.mxu1 %v2327_v27  ;;  %v2381_v12 = vpack.c.bf16 %v140_v10, %v138_v7  ;;  %v139_v14 = vld [vmem:[#allocation9 + $0x150] sm:$0xff]  ;;  %v142_v17 = vld [vmem:[#allocation9 + $0x168] sm:$0xff]  ;;  %v144_v18 = vld [vmem:[#allocation9 + $0x178] sm:$0xff] }
  0x6c   :  { %1520 = vmatprep.subr.bf16.mxu1 %v2330_v28  ;;  %v2386_v19 = vpack.c.bf16 %v139_v14, %v137_v13  ;;  %v2389_v20 = vpack.c.bf16 %v144_v18, %v142_v17  ;;  %v141_v23 = vld [vmem:[#allocation9 + $0x160] sm:$0xff]  ;;  %v143_v24 = vld [vmem:[#allocation9 + $0x170] sm:$0xff]  ;;  %v146_v25 = vld [vmem:[#allocation9 + $0x188] sm:$0xff]  ;;  %v167_v5 = vshrl.u32 %v166_v1, 7 }
  0x6d   :  { %v148_v26 = vld [vmem:[#allocation9 + $0x198] sm:$0xff]  ;;  %v2394_v29 = vpack.c.bf16 %v143_v24, %v141_v23  ;;  %v145_v31 = vld [vmem:[#allocation9 + $0x180] sm:$0xff]  ;;  %v147_v32 = vld [vmem:[#allocation9 + $0x190] sm:$0xff] }
  0x6e   :  { %1454 = vmatpush1.bf16.msra.mxu0 %v2333_v33  ;;  %v2397_v30 = vpack.c.bf16 %v148_v26, %v146_v25  ;;  %v150_v35 = vld [vmem:[#allocation9 + $0x1a8] sm:$0xff]  ;;  %v152_v36 = vld [vmem:[#allocation9 + $0x1b8] sm:$0xff]  ;;  %v2402_v37 = vpack.c.bf16 %v147_v32, %v145_v31  ;;  %v149_v41 = vld [vmem:[#allocation9 + $0x1a0] sm:$0xff]  ;;  %v168_v6 = vsub.s32 0, %v167_v5  ;;  %v172_v10 = vsub.s32 1, %v167_v5 }
  0x6f   :  { %1456 = vmatprep.subr.bf16.mxu0 %v2336_v34  ;;  %1522 = vmatpush1.bf16.msra.mxu1 %v2333_v33  ;;  %v2405_v38 = vpack.c.bf16 %v152_v36, %v150_v35  ;;  %v151_v42 = vld [vmem:[#allocation9 + $0x1b0] sm:$0xff]  ;;  %v154_v43 = vld [vmem:[#allocation9 + $0x1c8] sm:$0xff]  ;;  %v156_v44 = vld [vmem:[#allocation9 + $0x1d8] sm:$0xff] }
  0x70   :  { %1524 = vmatprep.subr.bf16.mxu1 %v2336_v34  ;;  %v2410_v45 = vpack.c.bf16 %v151_v42, %v149_v41  ;;  %v2413_v46 = vpack.c.bf16 %v156_v44, %v154_v43  ;;  %v153_v49 = vld [vmem:[#allocation9 + $0x1c0] sm:$0xff]  ;;  %v155_v50 = vld [vmem:[#allocation9 + $0x1d0] sm:$0xff]  ;;  %v158_v51 = vld [vmem:[#allocation9 + $0x1e8] sm:$0xff] }
  0x71   :  { %v160_v52 = vld [vmem:[#allocation9 + $0x1f8] sm:$0xff]  ;;  %v2418_v55 = vpack.c.bf16 %v155_v50, %v153_v49  ;;  %v157_v57 = vld [vmem:[#allocation9 + $0x1e0] sm:$0xff]  ;;  %v159_v58 = vld [vmem:[#allocation9 + $0x1f0] sm:$0xff] }
  0x72   :  { %1458 = vmatpush1.bf16.msra.mxu0 %v2339_v39  ;;  %v2421_v56 = vpack.c.bf16 %v160_v52, %v158_v51  ;;  %v2426_v61 = vpack.c.bf16 %v159_v58, %v157_v57  ;;  %v89_v62 = vld [vmem:[#allocation11] sm:$0xff]  ;;  %v483_v63 = vld [vmem:[#allocation3 + $0x10] sm:$0xff]  ;;  %v161_v7 = vld [vmem:[#allocation8] sm:$0x3] }
  0x73   :  { %1460 = vmatprep.subr.bf16.mxu0 %v2342_v40  ;;  %1526 = vmatpush1.bf16.msra.mxu1 %v2339_v39  ;;  %v2479_v13 = vrot.slane %v161_v7, %v168_v6  ;;  %v2481_v14 = vrot.slane %v161_v7, %v172_v10  ;;  %v637_v31 = vld [vmem:[#allocation3 + $0x18] sm:$0xff]  ;;  %v791_v44 = vld [vmem:[#allocation3 + $0x20] sm:$0xff] }
  0x74   :  { %1528 = vmatprep.subr.bf16.mxu1 %v2342_v40 }
  0x76   :  { %1462 = vmatpush1.bf16.msra.mxu0 %v2345_v47 }
  0x77   :  { %1464 = vmatprep.subr.bf16.mxu0 %v2348_v48  ;;  %1530 = vmatpush1.bf16.msra.mxu1 %v2345_v47 }
  0x78   :  { %1532 = vmatprep.subr.bf16.mxu1 %v2348_v48 }
  0x7a   :  { %1466 = vmatpush1.bf16.msra.mxu0 %v2354_v53 }
  0x7b   :  { %1468 = vmatprep.subr.bf16.mxu0 %v2357_v54  ;;  %1534 = vmatpush1.bf16.msra.mxu1 %v2354_v53 }
  0x7c   :  { %1536 = vmatprep.subr.bf16.mxu1 %v2357_v54 }
  0x7e   :  { %1470 = vmatpush1.bf16.msra.mxu0 %v2362_v59 }
  0x7f   :  { %1472 = vmatprep.subr.bf16.mxu0 %v2365_v60  ;;  %1538 = vmatpush1.bf16.msra.mxu1 %v2362_v59 }
  0x80   :  { %1540 = vmatprep.subr.bf16.mxu1 %v2365_v60 }
  0x82   :  { %1474 = vmatpush1.bf16.msra.mxu0 %v2370_v2 }
  0x83   :  { %1476 = vmatprep.subr.bf16.mxu0 %v2373_v3  ;;  %1542 = vmatpush1.bf16.msra.mxu1 %v2370_v2 }
  0x84   :  { %1544 = vmatprep.subr.bf16.mxu1 %v2373_v3 }
  0x86   :  { %1478 = vmatpush1.bf16.msra.mxu0 %v2378_v11 }
  0x87   :  { %1480 = vmatprep.subr.bf16.mxu0 %v2381_v12  ;;  %1546 = vmatpush1.bf16.msra.mxu1 %v2378_v11 }
  0x88   :  { %1548 = vmatprep.subr.bf16.mxu1 %v2381_v12 }
  0x8a   :  { %1482 = vmatpush1.bf16.msra.mxu0 %v2386_v19 }
  0x8b   :  { %1484 = vmatprep.subr.bf16.mxu0 %v2389_v20  ;;  %1550 = vmatpush1.bf16.msra.mxu1 %v2386_v19 }
  0x8c   :  { %1552 = vmatprep.subr.bf16.mxu1 %v2389_v20 }
  0x8e   :  { %1486 = vmatpush1.bf16.msra.mxu0 %v2394_v29 }
  0x8f   :  { %1488 = vmatprep.subr.bf16.mxu0 %v2397_v30  ;;  %1554 = vmatpush1.bf16.msra.mxu1 %v2394_v29 }
  0x90   :  { %1556 = vmatprep.subr.bf16.mxu1 %v2397_v30 }
  0x92   :  { %1490 = vmatpush1.bf16.msra.mxu0 %v2402_v37 }
  0x93   :  { %1492 = vmatprep.subr.bf16.mxu0 %v2405_v38  ;;  %1558 = vmatpush1.bf16.msra.mxu1 %v2402_v37 }
  0x94   :  { %1560 = vmatprep.subr.bf16.mxu1 %v2405_v38 }
  0x96   :  { %1494 = vmatpush1.bf16.msra.mxu0 %v2410_v45 }
  0x97   :  { %1496 = vmatprep.subr.bf16.mxu0 %v2413_v46  ;;  %1562 = vmatpush1.bf16.msra.mxu1 %v2410_v45 }
  0x98   :  { %1564 = vmatprep.subr.bf16.mxu1 %v2413_v46 }
  0x9a   :  { %1498 = vmatpush1.bf16.msra.mxu0 %v2418_v55 }
  0x9b   :  { %1500 = vmatprep.subr.bf16.mxu0 %v2421_v56  ;;  %1566 = vmatpush1.bf16.msra.mxu1 %v2418_v55 }
  0x9c   :  { %1568 = vmatprep.subr.bf16.mxu1 %v2421_v56 }
  0x9e   :  { %1502 = vmatpush1.bf16.msra.mxu0 %v2426_v61 }
  0x9f   :  { %1572 = vmatprep.subr.bf16.mxu0 %v2303_v4  ;;  %1570 = vmatpush1.bf16.msra.mxu1 %v2426_v61 }
  0xa0   :  { %1640 = vmatprep.subr.bf16.mxu1 %v2303_v4 }
  0xa1   :  { %316 = vmatmul.mubr.f32.vlgmr.msra.gmra.mrb[0].mxu0 %v89_v62  ;;  %v945_v62 = vld [vmem:[#allocation3 + $0x28] sm:$0xff] }
  0xa2   :  { %1574 = vmatpush1.bf16.msra.mxu0 %v2305_v8  ;;  %551 = vmatprep.mubr.f32.mxu0 %v2203_v0 }
  0xa3   :  { %1576 = vmatprep.subr.bf16.mxu0 %v2307_v9 }
  0xa5   :  { %1429 = vmatmul.mubr.msk.f32.vlgmr.msra.gmra.mrb[2].mxu0 %vm176_vm0, %v483_v63 }
  0xa6   :  { %1578 = vmatpush1.bf16.msra.mxu0 %v2312_v15 }
  0xa7   :  { %1580 = vmatprep.subr.bf16.mxu0 %v2316_v16 }
  0xaa   :  { %1582 = vmatpush1.bf16.msra.mxu0 %v2321_v21 }
  0xab   :  { %1584 = vmatprep.subr.bf16.mxu0 %v2324_v22 }
  0xae   :  { %1586 = vmatpush1.bf16.msra.mxu0 %v2327_v27 }
  0xaf   :  { %1588 = vmatprep.subr.bf16.mxu0 %v2330_v28 }
  0xb2   :  { %1590 = vmatpush1.bf16.msra.mxu0 %v2333_v33 }
  0xb3   :  { %1592 = vmatprep.subr.bf16.mxu0 %v2336_v34 }
  0xb6   :  { %1594 = vmatpush1.bf16.msra.mxu0 %v2339_v39 }
  0xb7   :  { %1596 = vmatprep.subr.bf16.mxu0 %v2342_v40 }
  0xba   :  { %1598 = vmatpush1.bf16.msra.mxu0 %v2345_v47 }
  0xbb   :  { %1600 = vmatprep.subr.bf16.mxu0 %v2348_v48 }
  0xbe   :  { %1602 = vmatpush1.bf16.msra.mxu0 %v2354_v53 }
  0xbf   :  { %1604 = vmatprep.subr.bf16.mxu0 %v2357_v54 }
  0xc2   :  { %1606 = vmatpush1.bf16.msra.mxu0 %v2362_v59 }
  0xc3   :  { %1608 = vmatprep.subr.bf16.mxu0 %v2365_v60 }
  0xc6   :  { %1610 = vmatpush1.bf16.msra.mxu0 %v2370_v2 }
  0xc7   :  { %1612 = vmatprep.subr.bf16.mxu0 %v2373_v3 }
  0xca   :  { %1614 = vmatpush1.bf16.msra.mxu0 %v2378_v11 }
  0xcb   :  { %1616 = vmatprep.subr.bf16.mxu0 %v2381_v12 }
  0xce   :  { %1618 = vmatpush1.bf16.msra.mxu0 %v2386_v19 }
  0xcf   :  { %1620 = vmatprep.subr.bf16.mxu0 %v2389_v20 }
  0xd2   :  { %1622 = vmatpush1.bf16.msra.mxu0 %v2394_v29 }
  0xd3   :  { %1624 = vmatprep.subr.bf16.mxu0 %v2397_v30 }
  0xd6   :  { %1626 = vmatpush1.bf16.msra.mxu0 %v2402_v37 }
  0xd7   :  { %1628 = vmatprep.subr.bf16.mxu0 %v2405_v38 }
  0xda   :  { %1630 = vmatpush1.bf16.msra.mxu0 %v2410_v45 }
  0xdb   :  { %1632 = vmatprep.subr.bf16.mxu0 %v2413_v46 }
  0xde   :  { %1634 = vmatpush1.bf16.msra.mxu0 %v2418_v55 }
  0xdf   :  { %1636 = vmatprep.subr.bf16.mxu0 %v2421_v56 }
  0xe2   :  { %1638 = vmatpush1.bf16.msra.mxu0 %v2426_v61 }
  0xe3   :  { %1708 = vmatprep.subr.bf16.mxu0 %v2303_v4 }
 0x174   :  { %v317_v17 = vpop.f32.mrb[0].mxu0 }
 0x175   :  { %v1979_v18 = vadd.f32 %v317_v17, %v2479_v13  ;;  %v319_v23 = vpop.f32.mrb[1].mxu0 }
 0x176   :  { %v1980_v24 = vadd.f32 %v319_v23, %v2481_v14 }
 0x177   :  { %2022 = vtanh.f32 %v1979_v18 }
 0x178   :  { %2024 = vtanh.f32 %v1980_v24 }
 0x181   :  { %v2023_v25 = vpop.eup %2022 }
 0x182   :  { %v2025_v26 = vpop.eup %2024  ;;  %326 = vst [vmem:[#allocation12] sm:$0xff] %v2023_v25 }
 0x183   :  { %327 = vst [vmem:[#allocation12 + $0x8] sm:$0xff] %v2025_v26  ;;  %468 = vmatprep.mubr.f32.mxu1 %v2025_v26 }
 0x184   :  { %469 = vmatmul.mubr.f32.vlgmr.msra.gmra.mrb[0].mxu1 %v2023_v25 }
 0x185   :  { %1642 = vmatpush1.bf16.msra.mxu1 %v2305_v8  ;;  %705 = vmatprep.mubr.f32.mxu1 %v2203_v0 }
 0x186   :  { %1644 = vmatprep.subr.bf16.mxu1 %v2307_v9 }
 0x188   :  { %1430 = vmatmul.mubr.msk.f32.vlgmr.msra.gmra.mrb[2].mxu1 %vm176_vm0, %v637_v31  ;;  %v1253_v31 = vld [vmem:[#allocation3 + $0x38] sm:$0xff] }
 0x189   :  { %1646 = vmatpush1.bf16.msra.mxu1 %v2312_v15 }
 0x18a   :  { %1648 = vmatprep.subr.bf16.mxu1 %v2316_v16 }
 0x18d   :  { %1650 = vmatpush1.bf16.msra.mxu1 %v2321_v21 }
 0x18e   :  { %1652 = vmatprep.subr.bf16.mxu1 %v2324_v22 }
 0x191   :  { %1654 = vmatpush1.bf16.msra.mxu1 %v2327_v27 }
 0x192   :  { %1656 = vmatprep.subr.bf16.mxu1 %v2330_v28 }
 0x195   :  { %1658 = vmatpush1.bf16.msra.mxu1 %v2333_v33 }
 0x196   :  { %1660 = vmatprep.subr.bf16.mxu1 %v2336_v34 }
 0x199   :  { %1662 = vmatpush1.bf16.msra.mxu1 %v2339_v39 }
 0x19a   :  { %1664 = vmatprep.subr.bf16.mxu1 %v2342_v40 }
 0x19d   :  { %1666 = vmatpush1.bf16.msra.mxu1 %v2345_v47 }
 0x19e   :  { %1668 = vmatprep.subr.bf16.mxu1 %v2348_v48 }
 0x1a1   :  { %1670 = vmatpush1.bf16.msra.mxu1 %v2354_v53 }
 0x1a2   :  { %1672 = vmatprep.subr.bf16.mxu1 %v2357_v54 }
 0x1a5   :  { %1674 = vmatpush1.bf16.msra.mxu1 %v2362_v59 }
 0x1a6   :  { %1676 = vmatprep.subr.bf16.mxu1 %v2365_v60 }
 0x1a9   :  { %1678 = vmatpush1.bf16.msra.mxu1 %v2370_v2 }
 0x1aa   :  { %1680 = vmatprep.subr.bf16.mxu1 %v2373_v3 }
 0x1ad   :  { %1682 = vmatpush1.bf16.msra.mxu1 %v2378_v11 }
 0x1ae   :  { %1684 = vmatprep.subr.bf16.mxu1 %v2381_v12 }
 0x1b1   :  { %1686 = vmatpush1.bf16.msra.mxu1 %v2386_v19 }
 0x1b2   :  { %1688 = vmatprep.subr.bf16.mxu1 %v2389_v20 }
 0x1b5   :  { %1690 = vmatpush1.bf16.msra.mxu1 %v2394_v29 }
 0x1b6   :  { %1692 = vmatprep.subr.bf16.mxu1 %v2397_v30 }
 0x1b9   :  { %1694 = vmatpush1.bf16.msra.mxu1 %v2402_v37 }
 0x1ba   :  { %1696 = vmatprep.subr.bf16.mxu1 %v2405_v38 }
 0x1bd   :  { %1698 = vmatpush1.bf16.msra.mxu1 %v2410_v45 }
 0x1be   :  { %1700 = vmatprep.subr.bf16.mxu1 %v2413_v46 }
 0x1c1   :  { %1702 = vmatpush1.bf16.msra.mxu1 %v2418_v55 }
 0x1c2   :  { %1704 = vmatprep.subr.bf16.mxu1 %v2421_v56 }
 0x1c5   :  { %1706 = vmatpush1.bf16.msra.mxu1 %v2426_v61 }
 0x1c6   :  { %1776 = vmatprep.subr.bf16.mxu1 %v2303_v4 }
 0x257   :  { %v470_v32 = vpop.f32.mrb[0].mxu1 }
 0x258   :  { %v1981_v35 = vadd.f32 %v470_v32, %v2479_v13  ;;  %v472_v36 = vpop.f32.mrb[1].mxu1 }
 0x259   :  { %v1982_v41 = vadd.f32 %v472_v36, %v2481_v14 }
 0x25a   :  { %2026 = vtanh.f32 %v1981_v35 }
 0x25b   :  { %2028 = vtanh.f32 %v1982_v41 }
 0x264   :  { %v2027_v42 = vpop.eup %2026 }
 0x265   :  { %v2029_v43 = vpop.eup %2028  ;;  %480 = vst [vmem:[#allocation12 + $0x10] sm:$0xff] %v2027_v42 }
 0x266   :  { %481 = vst [vmem:[#allocation12 + $0x18] sm:$0xff] %v2029_v43  ;;  %622 = vmatprep.mubr.f32.mxu0 %v2029_v43 }
 0x267   :  { %623 = vmatmul.mubr.f32.vlgmr.msra.gmra.mrb[2].mxu0 %v2027_v42 }
 0x268   :  { %1710 = vmatpush1.bf16.msra.mxu0 %v2305_v8  ;;  %859 = vmatprep.mubr.f32.mxu0 %v2203_v0 }
 0x269   :  { %1712 = vmatprep.subr.bf16.mxu0 %v2307_v9 }
 0x26b   :  { %1431 = vmatmul.mubr.msk.f32.vlgmr.msra.gmra.mrb[4].mxu0 %vm176_vm0, %v791_v44 }
 0x26c   :  { %1714 = vmatpush1.bf16.msra.mxu0 %v2312_v15 }
 0x26d   :  { %1716 = vmatprep.subr.bf16.mxu0 %v2316_v16 }
 0x270   :  { %1718 = vmatpush1.bf16.msra.mxu0 %v2321_v21 }
 0x271   :  { %1720 = vmatprep.subr.bf16.mxu0 %v2324_v22 }
 0x274   :  { %1722 = vmatpush1.bf16.msra.mxu0 %v2327_v27 }
 0x275   :  { %1724 = vmatprep.subr.bf16.mxu0 %v2330_v28 }
 0x278   :  { %1726 = vmatpush1.bf16.msra.mxu0 %v2333_v33 }
 0x279   :  { %1728 = vmatprep.subr.bf16.mxu0 %v2336_v34 }
 0x27c   :  { %1730 = vmatpush1.bf16.msra.mxu0 %v2339_v39 }
 0x27d   :  { %1732 = vmatprep.subr.bf16.mxu0 %v2342_v40 }
 0x280   :  { %1734 = vmatpush1.bf16.msra.mxu0 %v2345_v47 }
 0x281   :  { %1736 = vmatprep.subr.bf16.mxu0 %v2348_v48 }
 0x284   :  { %1738 = vmatpush1.bf16.msra.mxu0 %v2354_v53 }
 0x285   :  { %1740 = vmatprep.subr.bf16.mxu0 %v2357_v54 }
 0x288   :  { %1742 = vmatpush1.bf16.msra.mxu0 %v2362_v59 }
 0x289   :  { %1744 = vmatprep.subr.bf16.mxu0 %v2365_v60 }
 0x28c   :  { %1746 = vmatpush1.bf16.msra.mxu0 %v2370_v2 }
 0x28d   :  { %1748 = vmatprep.subr.bf16.mxu0 %v2373_v3 }
 0x290   :  { %1750 = vmatpush1.bf16.msra.mxu0 %v2378_v11 }
 0x291   :  { %1752 = vmatprep.subr.bf16.mxu0 %v2381_v12 }
 0x294   :  { %1754 = vmatpush1.bf16.msra.mxu0 %v2386_v19 }
 0x295   :  { %1756 = vmatprep.subr.bf16.mxu0 %v2389_v20 }
 0x298   :  { %1758 = vmatpush1.bf16.msra.mxu0 %v2394_v29 }
 0x299   :  { %1760 = vmatprep.subr.bf16.mxu0 %v2397_v30 }
 0x29c   :  { %1762 = vmatpush1.bf16.msra.mxu0 %v2402_v37 }
 0x29d   :  { %1764 = vmatprep.subr.bf16.mxu0 %v2405_v38 }
 0x2a0   :  { %1766 = vmatpush1.bf16.msra.mxu0 %v2410_v45 }
 0x2a1   :  { %1768 = vmatprep.subr.bf16.mxu0 %v2413_v46 }
 0x2a4   :  { %1770 = vmatpush1.bf16.msra.mxu0 %v2418_v55 }
 0x2a5   :  { %1772 = vmatprep.subr.bf16.mxu0 %v2421_v56 }
 0x2a8   :  { %1774 = vmatpush1.bf16.msra.mxu0 %v2426_v61 }
 0x2a9   :  { %1844 = vmatprep.subr.bf16.mxu0 %v2303_v4 }
 0x33a   :  { %v624_v49 = vpop.f32.mrb[2].mxu0 }
 0x33b   :  { %v1983_v50 = vadd.f32 %v624_v49, %v2479_v13  ;;  %v626_v51 = vpop.f32.mrb[3].mxu0 }
 0x33c   :  { %v1984_v52 = vadd.f32 %v626_v51, %v2481_v14 }
 0x33d   :  { %2030 = vtanh.f32 %v1983_v50 }
 0x33e   :  { %2032 = vtanh.f32 %v1984_v52 }
 0x347   :  { %v2031_v57 = vpop.eup %2030 }
 0x348   :  { %v2033_v58 = vpop.eup %2032  ;;  %634 = vst [vmem:[#allocation12 + $0x20] sm:$0xff] %v2031_v57 }
 0x349   :  { %635 = vst [vmem:[#allocation12 + $0x28] sm:$0xff] %v2033_v58  ;;  %776 = vmatprep.mubr.f32.mxu1 %v2033_v58 }
 0x34a   :  { %777 = vmatmul.mubr.f32.vlgmr.msra.gmra.mrb[2].mxu1 %v2031_v57 }
 0x34b   :  { %1778 = vmatpush1.bf16.msra.mxu1 %v2305_v8  ;;  %1013 = vmatprep.mubr.f32.mxu1 %v2203_v0 }
 0x34c   :  { %1780 = vmatprep.subr.bf16.mxu1 %v2307_v9 }
 0x34e   :  { %1432 = vmatmul.mubr.msk.f32.vlgmr.msra.gmra.mrb[4].mxu1 %vm176_vm0, %v945_v62 }
 0x34f   :  { %1782 = vmatpush1.bf16.msra.mxu1 %v2312_v15 }
 0x350   :  { %1784 = vmatprep.subr.bf16.mxu1 %v2316_v16 }
 0x353   :  { %1786 = vmatpush1.bf16.msra.mxu1 %v2321_v21 }
 0x354   :  { %1788 = vmatprep.subr.bf16.mxu1 %v2324_v22 }
 0x357   :  { %1790 = vmatpush1.bf16.msra.mxu1 %v2327_v27 }
 0x358   :  { %1792 = vmatprep.subr.bf16.mxu1 %v2330_v28 }
 0x35b   :  { %1794 = vmatpush1.bf16.msra.mxu1 %v2333_v33 }
 0x35c   :  { %1796 = vmatprep.subr.bf16.mxu1 %v2336_v34 }
 0x35f   :  { %1798 = vmatpush1.bf16.msra.mxu1 %v2339_v39 }
 0x360   :  { %1800 = vmatprep.subr.bf16.mxu1 %v2342_v40 }
 0x363   :  { %1802 = vmatpush1.bf16.msra.mxu1 %v2345_v47 }
 0x364   :  { %1804 = vmatprep.subr.bf16.mxu1 %v2348_v48 }
 0x367   :  { %1806 = vmatpush1.bf16.msra.mxu1 %v2354_v53 }
 0x368   :  { %1808 = vmatprep.subr.bf16.mxu1 %v2357_v54 }
 0x36b   :  { %1810 = vmatpush1.bf16.msra.mxu1 %v2362_v59 }
 0x36c   :  { %1812 = vmatprep.subr.bf16.mxu1 %v2365_v60 }
 0x36f   :  { %1814 = vmatpush1.bf16.msra.mxu1 %v2370_v2 }
 0x370   :  { %1816 = vmatprep.subr.bf16.mxu1 %v2373_v3 }
 0x373   :  { %1818 = vmatpush1.bf16.msra.mxu1 %v2378_v11 }
 0x374   :  { %1820 = vmatprep.subr.bf16.mxu1 %v2381_v12 }
 0x377   :  { %1822 = vmatpush1.bf16.msra.mxu1 %v2386_v19 }
 0x378   :  { %1824 = vmatprep.subr.bf16.mxu1 %v2389_v20 }
 0x37b   :  { %1826 = vmatpush1.bf16.msra.mxu1 %v2394_v29 }
 0x37c   :  { %1828 = vmatprep.subr.bf16.mxu1 %v2397_v30 }
 0x37f   :  { %1830 = vmatpush1.bf16.msra.mxu1 %v2402_v37 }
 0x380   :  { %1832 = vmatprep.subr.bf16.mxu1 %v2405_v38 }
 0x383   :  { %1834 = vmatpush1.bf16.msra.mxu1 %v2410_v45 }
 0x384   :  { %1836 = vmatprep.subr.bf16.mxu1 %v2413_v46 }
 0x387   :  { %1838 = vmatpush1.bf16.msra.mxu1 %v2418_v55 }
 0x388   :  { %1840 = vmatprep.subr.bf16.mxu1 %v2421_v56 }
 0x38b   :  { %1842 = vmatpush1.bf16.msra.mxu1 %v2426_v61 }
 0x38c   :  { %1912 = vmatprep.subr.bf16.mxu1 %v2303_v4  ;;  %v1099_v4 = vld [vmem:[#allocation3 + $0x30] sm:$0xff] }
 0x41d   :  { %v778_v63 = vpop.f32.mrb[2].mxu1 }
 0x41e   :  { %v1985_v1 = vadd.f32 %v778_v63, %v2479_v13  ;;  %v780_v5 = vpop.f32.mrb[3].mxu1 }
 0x41f   :  { %v1986_v6 = vadd.f32 %v780_v5, %v2481_v14 }
 0x420   :  { %2034 = vtanh.f32 %v1985_v1 }
 0x421   :  { %2036 = vtanh.f32 %v1986_v6 }
 0x42a   :  { %v2035_v7 = vpop.eup %2034 }
 0x42b   :  { %v2037_v10 = vpop.eup %2036  ;;  %788 = vst [vmem:[#allocation12 + $0x30] sm:$0xff] %v2035_v7 }
 0x42c   :  { %789 = vst [vmem:[#allocation12 + $0x38] sm:$0xff] %v2037_v10  ;;  %930 = vmatprep.mubr.f32.mxu0 %v2037_v10 }
 0x42d   :  { %931 = vmatmul.mubr.f32.vlgmr.msra.gmra.mrb[4].mxu0 %v2035_v7 }
 0x42e   :  { %1846 = vmatpush1.bf16.msra.mxu0 %v2305_v8  ;;  %1167 = vmatprep.mubr.f32.mxu0 %v2203_v0 }
 0x42f   :  { %1848 = vmatprep.subr.bf16.mxu0 %v2307_v9 }
 0x431   :  { %1433 = vmatmul.mubr.msk.f32.vlgmr.msra.gmra.mrb[6].mxu0 %vm176_vm0, %v1099_v4 }
 0x432   :  { %1850 = vmatpush1.bf16.msra.mxu0 %v2312_v15 }
 0x433   :  { %1852 = vmatprep.subr.bf16.mxu0 %v2316_v16 }
 0x436   :  { %1854 = vmatpush1.bf16.msra.mxu0 %v2321_v21 }
 0x437   :  { %1856 = vmatprep.subr.bf16.mxu0 %v2324_v22 }
 0x43a   :  { %1858 = vmatpush1.bf16.msra.mxu0 %v2327_v27 }
 0x43b   :  { %1860 = vmatprep.subr.bf16.mxu0 %v2330_v28 }
 0x43e   :  { %1862 = vmatpush1.bf16.msra.mxu0 %v2333_v33 }
 0x43f   :  { %1864 = vmatprep.subr.bf16.mxu0 %v2336_v34 }
 0x442   :  { %1866 = vmatpush1.bf16.msra.mxu0 %v2339_v39 }
 0x443   :  { %1868 = vmatprep.subr.bf16.mxu0 %v2342_v40 }
 0x446   :  { %1870 = vmatpush1.bf16.msra.mxu0 %v2345_v47 }
 0x447   :  { %1872 = vmatprep.subr.bf16.mxu0 %v2348_v48 }
 0x44a   :  { %1874 = vmatpush1.bf16.msra.mxu0 %v2354_v53 }
 0x44b   :  { %1876 = vmatprep.subr.bf16.mxu0 %v2357_v54 }
 0x44e   :  { %1878 = vmatpush1.bf16.msra.mxu0 %v2362_v59 }
 0x44f   :  { %1880 = vmatprep.subr.bf16.mxu0 %v2365_v60 }
 0x452   :  { %1882 = vmatpush1.bf16.msra.mxu0 %v2370_v2 }
 0x453   :  { %1884 = vmatprep.subr.bf16.mxu0 %v2373_v3 }
 0x456   :  { %1886 = vmatpush1.bf16.msra.mxu0 %v2378_v11 }
 0x457   :  { %1888 = vmatprep.subr.bf16.mxu0 %v2381_v12 }
 0x45a   :  { %1890 = vmatpush1.bf16.msra.mxu0 %v2386_v19 }
 0x45b   :  { %1892 = vmatprep.subr.bf16.mxu0 %v2389_v20 }
 0x45e   :  { %1894 = vmatpush1.bf16.msra.mxu0 %v2394_v29 }
 0x45f   :  { %1896 = vmatprep.subr.bf16.mxu0 %v2397_v30 }
 0x462   :  { %1898 = vmatpush1.bf16.msra.mxu0 %v2402_v37 }
 0x463   :  { %1900 = vmatprep.subr.bf16.mxu0 %v2405_v38 }
 0x466   :  { %1902 = vmatpush1.bf16.msra.mxu0 %v2410_v45 }
 0x467   :  { %1904 = vmatprep.subr.bf16.mxu0 %v2413_v46 }
 0x46a   :  { %1906 = vmatpush1.bf16.msra.mxu0 %v2418_v55 }
 0x46b   :  { %1908 = vmatprep.subr.bf16.mxu0 %v2421_v56 }
 0x46e   :  { %1910 = vmatpush1.bf16.msra.mxu0 %v2426_v61 }
 0x500   :  { %v932_v17 = vpop.f32.mrb[4].mxu0 }
 0x501   :  { %v1987_v18 = vadd.f32 %v932_v17, %v2479_v13  ;;  %v934_v23 = vpop.f32.mrb[5].mxu0 }
 0x502   :  { %v1988_v24 = vadd.f32 %v934_v23, %v2481_v14 }
 0x503   :  { %2038 = vtanh.f32 %v1987_v18 }
 0x504   :  { %2040 = vtanh.f32 %v1988_v24 }
 0x50d   :  { %v2039_v25 = vpop.eup %2038 }
 0x50e   :  { %v2041_v26 = vpop.eup %2040  ;;  %942 = vst [vmem:[#allocation12 + $0x40] sm:$0xff] %v2039_v25 }
 0x50f   :  { %943 = vst [vmem:[#allocation12 + $0x48] sm:$0xff] %v2041_v26  ;;  %1084 = vmatprep.mubr.f32.mxu1 %v2041_v26 }
 0x510   :  { %1085 = vmatmul.mubr.f32.vlgmr.msra.gmra.mrb[4].mxu1 %v2039_v25 }
 0x511   :  { %1914 = vmatpush1.bf16.msra.mxu1 %v2305_v8  ;;  %1321 = vmatprep.mubr.f32.mxu1 %v2203_v0 }
 0x512   :  { %1916 = vmatprep.subr.bf16.mxu1 %v2307_v9 }
 0x514   :  { %1434 = vmatmul.mubr.msk.f32.vlgmr.msra.gmra.mrb[6].mxu1 %vm176_vm0, %v1253_v31 }
 0x515   :  { %1918 = vmatpush1.bf16.msra.mxu1 %v2312_v15 }
 0x516   :  { %1920 = vmatprep.subr.bf16.mxu1 %v2316_v16 }
 0x519   :  { %1922 = vmatpush1.bf16.msra.mxu1 %v2321_v21 }
 0x51a   :  { %1924 = vmatprep.subr.bf16.mxu1 %v2324_v22 }
 0x51d   :  { %1926 = vmatpush1.bf16.msra.mxu1 %v2327_v27 }
 0x51e   :  { %1928 = vmatprep.subr.bf16.mxu1 %v2330_v28 }
 0x521   :  { %1930 = vmatpush1.bf16.msra.mxu1 %v2333_v33 }
 0x522   :  { %1932 = vmatprep.subr.bf16.mxu1 %v2336_v34 }
 0x525   :  { %1934 = vmatpush1.bf16.msra.mxu1 %v2339_v39 }
 0x526   :  { %1936 = vmatprep.subr.bf16.mxu1 %v2342_v40 }
 0x529   :  { %1938 = vmatpush1.bf16.msra.mxu1 %v2345_v47 }
 0x52a   :  { %1940 = vmatprep.subr.bf16.mxu1 %v2348_v48 }
 0x52d   :  { %1942 = vmatpush1.bf16.msra.mxu1 %v2354_v53 }
 0x52e   :  { %1944 = vmatprep.subr.bf16.mxu1 %v2357_v54 }
 0x531   :  { %1946 = vmatpush1.bf16.msra.mxu1 %v2362_v59 }
 0x532   :  { %1948 = vmatprep.subr.bf16.mxu1 %v2365_v60 }
 0x535   :  { %1950 = vmatpush1.bf16.msra.mxu1 %v2370_v2 }
 0x536   :  { %1952 = vmatprep.subr.bf16.mxu1 %v2373_v3 }
 0x539   :  { %1954 = vmatpush1.bf16.msra.mxu1 %v2378_v11 }
 0x53a   :  { %1956 = vmatprep.subr.bf16.mxu1 %v2381_v12 }
 0x53d   :  { %1958 = vmatpush1.bf16.msra.mxu1 %v2386_v19 }
 0x53e   :  { %1960 = vmatprep.subr.bf16.mxu1 %v2389_v20 }
 0x541   :  { %1962 = vmatpush1.bf16.msra.mxu1 %v2394_v29 }
 0x542   :  { %1964 = vmatprep.subr.bf16.mxu1 %v2397_v30 }
 0x545   :  { %1966 = vmatpush1.bf16.msra.mxu1 %v2402_v37 }
 0x546   :  { %1968 = vmatprep.subr.bf16.mxu1 %v2405_v38 }
 0x549   :  { %1970 = vmatpush1.bf16.msra.mxu1 %v2410_v45 }
 0x54a   :  { %1972 = vmatprep.subr.bf16.mxu1 %v2413_v46 }
 0x54d   :  { %1974 = vmatpush1.bf16.msra.mxu1 %v2418_v55 }
 0x54e   :  { %1976 = vmatprep.subr.bf16.mxu1 %v2421_v56 }
 0x551   :  { %1978 = vmatpush1.bf16.msra.mxu1 %v2426_v61 }
 0x5e3   :  { %v1086_v0 = vpop.f32.mrb[4].mxu1 }
 0x5e4   :  { %v1989_v8 = vadd.f32 %v1086_v0, %v2479_v13  ;;  %v1088_v9 = vpop.f32.mrb[5].mxu1 }
 0x5e5   :  { %v1990_v15 = vadd.f32 %v1088_v9, %v2481_v14 }
 0x5e6   :  { %2042 = vtanh.f32 %v1989_v8 }
 0x5e7   :  { %2044 = vtanh.f32 %v1990_v15 }
 0x5f0   :  { %v2043_v16 = vpop.eup %2042 }
 0x5f1   :  { %v2045_v21 = vpop.eup %2044  ;;  %1096 = vst [vmem:[#allocation12 + $0x50] sm:$0xff] %v2043_v16 }
 0x5f2   :  { %1097 = vst [vmem:[#allocation12 + $0x58] sm:$0xff] %v2045_v21  ;;  %1238 = vmatprep.mubr.f32.mxu0 %v2045_v21 }
 0x5f3   :  { %1239 = vmatmul.mubr.f32.vlgmr.msra.gmra.mrb[6].mxu0 %v2043_v16 }
 0x6c6   :  { %v1240_v22 = vpop.f32.mrb[6].mxu0 }
 0x6c7   :  { %v1991_v27 = vadd.f32 %v1240_v22, %v2479_v13  ;;  %v1242_v28 = vpop.f32.mrb[7].mxu0 }
 0x6c8   :  { %v1992_v33 = vadd.f32 %v1242_v28, %v2481_v14 }
 0x6c9   :  { %2046 = vtanh.f32 %v1991_v27 }
 0x6ca   :  { %2048 = vtanh.f32 %v1992_v33 }
 0x6d3   :  { %v2047_v34 = vpop.eup %2046 }
 0x6d4   :  { %v2049_v39 = vpop.eup %2048  ;;  %1250 = vst [vmem:[#allocation12 + $0x60] sm:$0xff] %v2047_v34 }
 0x6d5   :  { %1251 = vst [vmem:[#allocation12 + $0x68] sm:$0xff] %v2049_v39  ;;  %1392 = vmatprep.mubr.f32.mxu1 %v2049_v39 }
 0x6d6   :  { %1393 = vmatmul.mubr.f32.vlgmr.msra.gmra.mrb[6].mxu1 %v2047_v34 }
 0x7a9   :  { %v1394_v40 = vpop.f32.mrb[6].mxu1 }
 0x7aa   :  { %v1993_v47 = vadd.f32 %v1394_v40, %v2479_v13  ;;  %v1396_v48 = vpop.f32.mrb[7].mxu1 }
 0x7ab   :  { %v1994_v53 = vadd.f32 %v1396_v48, %v2481_v14 }
 0x7ac   :  { %2050 = vtanh.f32 %v1993_v47 }
 0x7ad   :  { %2052 = vtanh.f32 %v1994_v53 }
 0x7b6   :  { %v2051_v54 = vpop.eup %2050 }
 0x7b7   :  { %v2053_v59 = vpop.eup %2052  ;;  %1404 = vst [vmem:[#allocation12 + $0x70] sm:$0xff] %v2051_v54 }
 0x7b8   :  { %1405 = vst [vmem:[#allocation12 + $0x78] sm:$0xff] %v2053_v59 }
 0x7b9   :  { %2175 = shalt.err (!%p2172_p2)
}
 0x7ba   :  { %s2176_s9 = scalar_lea.hbm %s2697_s5, 2048 }
 0x7bb   :  { %p2177_p3 = scmp.ne.s32.totalorder %s2697_s5, %s2176_s9  ;;  %p2180_p4 = scmp.lt.u32.totalorder %s2176_s9, %s2697_s5 }
 0x7bd   :  { %p2182_p5 = pnand %p2180_p4, %p2177_p3 }
 0x7bf   :  { %2185 = shalt.err (!%p2182_p5)
}
 0x7c0   :  { %1419 = dma.vmem_to_hbm [thread:$0]  %s1414_s30, 2048, %s2697_s5, [#allocation5], %s2195_s28, %s2195_s28, %s2196_s29  }
 0x7c1   :  { %2192 = dma.done.wait [#allocation5], 2048  }
 0x7c2   :  { %2193 = vsyncadd [#allocation5], 4294965248 }
 0x7c3   :  { %1423 = vsyncpa [#allocation4], 1 }
 0x7c4   :  { %1424 = vsyncpa [#allocation7], 1 }
 0x7c5   :  { %1425 = vsyncpa [#allocation10], 1 }
 0x7c6   :  { %1426 = vsyncpa [#allocation5], 1 }

// kernel: tpu_custom_call.1
= control target key start
LH: loop header
LB: loop body
LE: loop exit
PB: predicated region body
PF: predicated region fallthrough
CT: control target
= control target key end

     0   :  { %10 = vsyncpa [#allocation4], 0  ;;  %s2692_s0 = inlined_call_operand.hbm [shape: f32[8,8,16], index: 0, kind: input, shape index: {}]   ;;  %s2693_s1 = inlined_call_operand.hbm [shape: f32[16,256], index: 1, kind: input, shape index: {}]   ;;  %s2694_s2 = inlined_call_operand.hbm [shape: f32[1,256], index: 2, kind: input, shape index: {}]   ;;  %s2695_s3 = inlined_call_operand.hbm [shape: f32[256,256], index: 3, kind: input, shape index: {}]   ;;  %s2696_s4 = inlined_call_operand.hbm [shape: f32[8,256], index: 4, kind: input, shape index: {}]   ;;  %s2697_s5 = inlined_call_operand.hbm [shape: f32[8,8,256], index: 5, kind: output, shape index: {}]  }
   0x1   :  { %11 = vsyncpa [#allocation7], 0 }
   0x2   :  { %12 = vsyncpa [#allocation10], 0 }
   0x3   :  { %13 = vsyncpa [#allocation5], 0  ;;  %s2194_s18 = smov [#allocation6]   ;;  %s2054_s22 = scalar_lea.hbm %s2693_s1, 512 }
   0x4   :  { %s31_s19 = sshll.u32 %s2194_s18, 4  ;;  %p2055_p0 = scmp.ne.s32.totalorder %s2693_s1, %s2054_s22  ;;  %s32_s19 = int_to_ptr.vmem [resolvable:$true] %s31_s19 }
   0x5   :  { %p2058_p1 = scmp.lt.u32.totalorder %s2054_s22, %s2693_s1 }
   0x7   :  { %p2060_p2 = pnand %p2058_p1, %p2055_p0 }
   0x9   :  { %2063 = shalt.err (!%p2060_p2)
}
   0xa   :  { %s2064_s27 = scalar_lea.vmem %s32_s19, 512  ;;  %p2069_p4 = scmp.lt.s32.totalorder %s32_s19, %s32_s19 }
   0xb   :  { %p2065_p3 = scmp.ne.s32.totalorder %s32_s19, %s2064_s27  ;;  %p2070_p5 = scmp.lt.s32.totalorder %s2064_s27, %s2064_s27 }
   0xd   :  { %p2071_p6 = por %p2070_p5, %p2069_p4 }
   0xf   :  { %p2072_p7 = pnand %p2071_p6, %p2065_p3 }
  0x11   :  { %2075 = shalt.err (!%p2072_p7)
}
  0x12   :  { %s2195_s28 = smov 256   ;;  %s2196_s29 = smov 16  }
  0x13   :  { %37 = dma.hbm_to_vmem [thread:$0]  %s2693_s1, 512, %s32_s19, [#allocation7], %s2195_s28, %s2195_s28, %s2196_s29  }
  0x14   :  { %s2197_s7 = smov [#allocation9]   ;;  %s2198_s9 = smov [#allocation3]  }
  0x15   :  { %s53_s8 = sshll.u32 %s2197_s7, 4  ;;  %s19_s10 = sshll.u32 %s2198_s9, 4  ;;  %s54_s8 = int_to_ptr.vmem [resolvable:$true] %s53_s8  ;;  %s20_s10 = int_to_ptr.vmem [resolvable:$true] %s19_s10 }
  0x16   :  { %s2076_s13 = scalar_lea.hbm %s2695_s3, 8192 }
  0x17   :  { %p2077_p8 = scmp.ne.s32.totalorder %s2695_s3, %s2076_s13  ;;  %p2080_p9 = scmp.lt.u32.totalorder %s2076_s13, %s2695_s3 }
  0x19   :  { %p2082_p10 = pnand %p2080_p9, %p2077_p8 }
  0x1b   :  { %2085 = shalt.err (!%p2082_p10)
}
  0x1c   :  { %s2086_s1 = scalar_lea.vmem %s54_s8, 8192  ;;  %p2091_p12 = scmp.lt.s32.totalorder %s54_s8, %s54_s8 }
  0x1d   :  { %p2087_p11 = scmp.ne.s32.totalorder %s54_s8, %s2086_s1  ;;  %p2092_p13 = scmp.lt.s32.totalorder %s2086_s1, %s2086_s1 }
  0x1f   :  { %p2093_p0 = por %p2092_p13, %p2091_p12 }
  0x21   :  { %p2094_p1 = pnand %p2093_p0, %p2087_p11 }
  0x23   :  { %2097 = shalt.err (!%p2094_p1)
}
  0x24   :  { %59 = dma.hbm_to_vmem [thread:$0]  %s2695_s3, 8192, %s54_s8, [#allocation10], %s2195_s28, %s2195_s28, %s2196_s29  }
  0x25   :  { %s2098_s22 = scalar_lea.hbm %s2692_s0, 1024 }
  0x26   :  { %p2099_p2 = scmp.ne.s32.totalorder %s2692_s0, %s2098_s22  ;;  %p2102_p3 = scmp.lt.u32.totalorder %s2098_s22, %s2692_s0 }
  0x28   :  { %p2104_p4 = pnand %p2102_p3, %p2099_p2 }
  0x2a   :  { %2107 = shalt.err (!%p2104_p4)
}
  0x2b   :  { %s2108_s27 = scalar_lea.vmem %s20_s10, 1024  ;;  %p2113_p6 = scmp.lt.s32.totalorder %s20_s10, %s20_s10 }
  0x2c   :  { %p2109_p5 = scmp.ne.s32.totalorder %s20_s10, %s2108_s27  ;;  %p2114_p7 = scmp.lt.s32.totalorder %s2108_s27, %s2108_s27 }
  0x2e   :  { %p2115_p8 = por %p2114_p7, %p2113_p6 }
  0x30   :  { %p2116_p9 = pnand %p2115_p8, %p2109_p5 }
  0x32   :  { %2119 = shalt.err (!%p2116_p9)
}
  0x33   :  { %s2199_s3 = smov 128   ;;  %s2200_s30 = smov 8  }
  0x34   :  { %25 = dma.hbm_to_vmem [thread:$0]  %s2692_s0, 1024, %s20_s10, [#allocation4], %s2199_s3, %s2199_s3, %s2200_s30  }
  0x35   :  { %s2201_s8 = smov [#allocation8]   ;;  %s2202_s11 = smov [#allocation11]  }
  0x36   :  { %s44_s9 = sshll.u32 %s2201_s8, 4  ;;  %s66_s12 = sshll.u32 %s2202_s11, 4  ;;  %s45_s9 = int_to_ptr.vmem [resolvable:$true] %s44_s9  ;;  %s67_s12 = int_to_ptr.vmem [resolvable:$true] %s66_s12 }
  0x37   :  { %s2120_s15 = scalar_lea.hbm %s2694_s2, 32 }
  0x38   :  { %p2121_p10 = scmp.ne.s32.totalorder %s2694_s2, %s2120_s15  ;;  %p2124_p11 = scmp.lt.u32.totalorder %s2120_s15, %s2694_s2 }
  0x3a   :  { %p2126_p12 = pnand %p2124_p11, %p2121_p10 }
  0x3c   :  { %2129 = shalt.err (!%p2126_p12)
}
  0x3d   :  { %s2130_s0 = scalar_lea.vmem %s45_s9, 32  ;;  %p2135_p0 = scmp.lt.s32.totalorder %s45_s9, %s45_s9 }
  0x3e   :  { %p2131_p13 = scmp.ne.s32.totalorder %s45_s9, %s2130_s0  ;;  %p2136_p1 = scmp.lt.s32.totalorder %s2130_s0, %s2130_s0 }
  0x40   :  { %p2137_p2 = por %p2136_p1, %p2135_p0 }
  0x42   :  { %p2138_p3 = pnand %p2137_p2, %p2131_p13 }
  0x44   :  { %2141 = shalt.err (!%p2138_p3)
}
  0x45   :  { %47 = dma.hbm_to_vmem [thread:$0]  %s2694_s2, 32, %s45_s9, [#allocation7]  }
  0x46   :  { %s2142_s22 = scalar_lea.hbm %s2696_s4, 256 }
  0x47   :  { %p2143_p4 = scmp.ne.s32.totalorder %s2696_s4, %s2142_s22  ;;  %p2146_p5 = scmp.lt.u32.totalorder %s2142_s22, %s2696_s4 }
  0x49   :  { %p2148_p6 = pnand %p2146_p5, %p2143_p4 }
  0x4b   :  { %2151 = shalt.err (!%p2148_p6)
}
  0x4c   :  { %s2152_s27 = scalar_lea.vmem %s67_s12, 256  ;;  %p2157_p8 = scmp.lt.s32.totalorder %s67_s12, %s67_s12 }
  0x4d   :  { %p2153_p7 = scmp.ne.s32.totalorder %s67_s12, %s2152_s27  ;;  %p2158_p9 = scmp.lt.s32.totalorder %s2152_s27, %s2152_s27 }
  0x4f   :  { %p2159_p10 = por %p2158_p9, %p2157_p8 }
  0x51   :  { %p2160_p11 = pnand %p2159_p10, %p2153_p7 }
  0x53   :  { %2163 = shalt.err (!%p2160_p11)
}
  0x54   :  { %69 = dma.hbm_to_vmem [thread:$0]  %s2696_s4, 256, %s67_s12, [#allocation10]  }
  0x55   :  { %2186 = dma.done.wait [#allocation4], 1024  }
  0x56   :  { %2187 = vsyncadd [#allocation4], 4294966272 }
  0x57   :  { %2188 = dma.done.wait [#allocation7], 544  }
  0x58   :  { %2189 = vsyncadd [#allocation7], 4294966752 }
  0x59   :  { %2190 = dma.done.wait [#allocation10], 8448  }
  0x5a   :  { %2191 = vsyncadd [#allocation10], 4294958848  ;;  %v2203_v0 = vmov 0.0   ;;  %v94_v1 = vld [vmem:[#allocation6 + $0x8] sm:$0xff]  ;;  %v96_v2 = vld [vmem:[#allocation6 + $0x18] sm:$0xff]  ;;  %vm176_vm0 = vcmask 130048  }
  0x5b   :  { %244 = vmatprep.mubr.f32.mxu0 %v2203_v0  ;;  %397 = vmatprep.mubr.f32.mxu1 %v2203_v0  ;;  %v93_v3 = vld [vmem:[#allocation6] sm:$0xff]  ;;  %v2303_v4 = vpack.c.bf16 %v96_v2, %v94_v1  ;;  %v95_v5 = vld [vmem:[#allocation6 + $0x10] sm:$0xff]  ;;  %v329_v46 = vld [vmem:[#allocation3 + $0x8] sm:$0xff]  ;;  %s2204_s4 = smov [#allocation12]  }
  0x5c   :  { %v98_v6 = vld [vmem:[#allocation9 + $0x8] sm:$0xff]  ;;  %v100_v7 = vld [vmem:[#allocation9 + $0x18] sm:$0xff]  ;;  %v2305_v8 = vpack.c.bf16 %v95_v5, %v93_v3  ;;  %v97_v10 = vld [vmem:[#allocation9] sm:$0xff]  ;;  %s1413_s30 = sshll.u32 %s2204_s4, 4  ;;  %s1414_s30 = int_to_ptr.vmem [resolvable:$true] %s1413_s30 }
  0x5d   :  { %v2307_v9 = vpack.c.bf16 %v100_v7, %v98_v6  ;;  %v99_v11 = vld [vmem:[#allocation9 + $0x10] sm:$0xff]  ;;  %1436 = vmatprep.subr.bf16.mxu0 %v2303_v4  ;;  %v102_v12 = vld [vmem:[#allocation9 + $0x28] sm:$0xff]  ;;  %v104_v13 = vld [vmem:[#allocation9 + $0x38] sm:$0xff]  ;;  %1504 = vmatprep.subr.bf16.mxu1 %v2303_v4  ;;  %s2164_s6 = scalar_lea.vmem %s1414_s30, 2048  ;;  %p2169_p13 = scmp.lt.s32.totalorder %s1414_s30, %s1414_s30 }
  0x5e   :  { %1438 = vmatpush1.bf16.msra.mxu0 %v2305_v8  ;;  %v164_v14 = vld [vmem:[#allocation3] sm:$0xff]  ;;  %v2312_v15 = vpack.c.bf16 %v99_v11, %v97_v10  ;;  %1506 = vmatpush1.bf16.msra.mxu1 %v2305_v8  ;;  %v2316_v16 = vpack.c.bf16 %v104_v13, %v102_v12  ;;  %v103_v18 = vld [vmem:[#allocation9 + $0x30] sm:$0xff]  ;;  %v106_v19 = vld [vmem:[#allocation9 + $0x48] sm:$0xff]  ;;  %p2165_p12 = scmp.ne.s32.totalorder %s1414_s30, %s2164_s6  ;;  %p2170_p0 = scmp.lt.s32.totalorder %s2164_s6, %s2164_s6 }
  0x5f   :  { %1440 = vmatprep.subr.bf16.mxu0 %v2307_v9  ;;  %v101_v17 = vld [vmem:[#allocation9 + $0x20] sm:$0xff]  ;;  %1508 = vmatprep.subr.bf16.mxu1 %v2307_v9  ;;  %v108_v20 = vld [vmem:[#allocation9 + $0x58] sm:$0xff]  ;;  %v107_v24 = vld [vmem:[#allocation9 + $0x50] sm:$0xff] }
  0x60   :  { %v2321_v21 = vpack.c.bf16 %v103_v18, %v101_v17  ;;  %v2324_v22 = vpack.c.bf16 %v108_v20, %v106_v19  ;;  %v105_v23 = vld [vmem:[#allocation9 + $0x40] sm:$0xff]  ;;  %v110_v25 = vld [vmem:[#allocation9 + $0x68] sm:$0xff]  ;;  %v112_v26 = vld [vmem:[#allocation9 + $0x78] sm:$0xff]  ;;  %p2171_p1 = por %p2170_p0, %p2169_p13 }
  0x61   :  { %1427 = vmatmul.mubr.msk.f32.vlgmr.msra.gmra.mrb[0].mxu0 %vm176_vm0, %v164_v14  ;;  %v2327_v27 = vpack.c.bf16 %v107_v24, %v105_v23  ;;  %v2330_v28 = vpack.c.bf16 %v112_v26, %v110_v25  ;;  %v109_v29 = vld [vmem:[#allocation9 + $0x60] sm:$0xff]  ;;  %v111_v30 = vld [vmem:[#allocation9 + $0x70] sm:$0xff]  ;;  %v114_v31 = vld [vmem:[#allocation9 + $0x88] sm:$0xff]  ;;  %1428 = vmatmul.mubr.msk.f32.vlgmr.msra.gmra.mrb[0].mxu1 %vm176_vm0, %v329_v46 }
  0x62   :  { %1442 = vmatpush1.bf16.msra.mxu0 %v2312_v15  ;;  %v116_v32 = vld [vmem:[#allocation9 + $0x98] sm:$0xff]  ;;  %v2333_v33 = vpack.c.bf16 %v111_v30, %v109_v29  ;;  %v113_v35 = vld [vmem:[#allocation9 + $0x80] sm:$0xff]  ;;  %v115_v36 = vld [vmem:[#allocation9 + $0x90] sm:$0xff]  ;;  %1510 = vmatpush1.bf16.msra.mxu1 %v2312_v15  ;;  %p2172_p2 = pnand %p2171_p1, %p2165_p12 }
  0x63   :  { %1444 = vmatprep.subr.bf16.mxu0 %v2316_v16  ;;  %v2336_v34 = vpack.c.bf16 %v116_v32, %v114_v31  ;;  %v118_v37 = vld [vmem:[#allocation9 + $0xa8] sm:$0xff]  ;;  %v120_v38 = vld [vmem:[#allocation9 + $0xb8] sm:$0xff]  ;;  %v2339_v39 = vpack.c.bf16 %v115_v36, %v113_v35  ;;  %v117_v41 = vld [vmem:[#allocation9 + $0xa0] sm:$0xff]  ;;  %1512 = vmatprep.subr.bf16.mxu1 %v2316_v16 }
  0x64   :  { %v2342_v40 = vpack.c.bf16 %v120_v38, %v118_v37  ;;  %v119_v42 = vld [vmem:[#allocation9 + $0xb0] sm:$0xff]  ;;  %v122_v43 = vld [vmem:[#allocation9 + $0xc8] sm:$0xff]  ;;  %v124_v44 = vld [vmem:[#allocation9 + $0xd8] sm:$0xff] }
  0x65   :  { %v90_v45 = vld [vmem:[#allocation11 + $0x8] sm:$0xff]  ;;  %v2345_v47 = vpack.c.bf16 %v119_v42, %v117_v41  ;;  %v2348_v48 = vpack.c.bf16 %v124_v44, %v122_v43  ;;  %v121_v49 = vld [vmem:[#allocation9 + $0xc0] sm:$0xff]  ;;  %v123_v50 = vld [vmem:[#allocation9 + $0xd0] sm:$0xff] }
  0x66   :  { %1446 = vmatpush1.bf16.msra.mxu0 %v2321_v21  ;;  %315 = vmatprep.mubr.f32.mxu0 %v90_v45  ;;  %v126_v51 = vld [vmem:[#allocation9 + $0xe8] sm:$0xff]  ;;  %v128_v52 = vld [vmem:[#allocation9 + $0xf8] sm:$0xff]  ;;  %v2354_v53 = vpack.c.bf16 %v123_v50, %v121_v49  ;;  %v125_v55 = vld [vmem:[#allocation9 + $0xe0] sm:$0xff] }
  0x67   :  { %1448 = vmatprep.subr.bf16.mxu0 %v2324_v22  ;;  %v2357_v54 = vpack.c.bf16 %v128_v52, %v126_v51  ;;  %v127_v56 = vld [vmem:[#allocation9 + $0xf0] sm:$0xff]  ;;  %v130_v57 = vld [vmem:[#allocation9 + $0x108] sm:$0xff]  ;;  %v132_v58 = vld [vmem:[#allocation9 + $0x118] sm:$0xff]  ;;  %1514 = vmatpush1.bf16.msra.mxu1 %v2321_v21 }
  0x68   :  { %1516 = vmatprep.subr.bf16.mxu1 %v2324_v22  ;;  %v2362_v59 = vpack.c.bf16 %v127_v56, %v125_v55  ;;  %v2365_v60 = vpack.c.bf16 %v132_v58, %v130_v57  ;;  %v129_v61 = vld [vmem:[#allocation9 + $0x100] sm:$0xff]  ;;  %v131_v62 = vld [vmem:[#allocation9 + $0x110] sm:$0xff]  ;;  %v134_v63 = vld [vmem:[#allocation9 + $0x128] sm:$0xff] }
  0x69   :  { %v136_v1 = vld [vmem:[#allocation9 + $0x138] sm:$0xff]  ;;  %v2370_v2 = vpack.c.bf16 %v131_v62, %v129_v61  ;;  %v133_v5 = vld [vmem:[#allocation9 + $0x120] sm:$0xff]  ;;  %v135_v6 = vld [vmem:[#allocation9 + $0x130] sm:$0xff] }
  0x6a   :  { %1450 = vmatpush1.bf16.msra.mxu0 %v2327_v27  ;;  %v2373_v3 = vpack.c.bf16 %v136_v1, %v134_v63  ;;  %v138_v7 = vld [vmem:[#allocation9 + $0x148] sm:$0xff]  ;;  %v140_v10 = vld [vmem:[#allocation9 + $0x158] sm:$0xff]  ;;  %v2378_v11 = vpack.c.bf16 %v135_v6, %v133_v5  ;;  %v137_v13 = vld [vmem:[#allocation9 + $0x140] sm:$0xff]  ;;  %v166_v1 = vlaneseq }
  0x6b   :  { %1452 = vmatprep.subr.bf16.mxu0 %v2330_v28  ;;  %1518 = vmatpush1.bf16.msra.mxu1 %v2327_v27  ;;  %v2381_v12 = vpack.c.bf16 %v140_v10, %v138_v7  ;;  %v139_v14 = vld [vmem:[#allocation9 + $0x150] sm:$0xff]  ;;  %v142_v17 = vld [vmem:[#allocation9 + $0x168] sm:$0xff]  ;;  %v144_v18 = vld [vmem:[#allocation9 + $0x178] sm:$0xff] }
  0x6c   :  { %1520 = vmatprep.subr.bf16.mxu1 %v2330_v28  ;;  %v2386_v19 = vpack.c.bf16 %v139_v14, %v137_v13  ;;  %v2389_v20 = vpack.c.bf16 %v144_v18, %v142_v17  ;;  %v141_v23 = vld [vmem:[#allocation9 + $0x160] sm:$0xff]  ;;  %v143_v24 = vld [vmem:[#allocation9 + $0x170] sm:$0xff]  ;;  %v146_v25 = vld [vmem:[#allocation9 + $0x188] sm:$0xff]  ;;  %v167_v5 = vshrl.u32 %v166_v1, 7 }
  0x6d   :  { %v148_v26 = vld [vmem:[#allocation9 + $0x198] sm:$0xff]  ;;  %v2394_v29 = vpack.c.bf16 %v143_v24, %v141_v23  ;;  %v145_v31 = vld [vmem:[#allocation9 + $0x180] sm:$0xff]  ;;  %v147_v32 = vld [vmem:[#allocation9 + $0x190] sm:$0xff] }
  0x6e   :  { %1454 = vmatpush1.bf16.msra.mxu0 %v2333_v33  ;;  %v2397_v30 = vpack.c.bf16 %v148_v26, %v146_v25  ;;  %v150_v35 = vld [vmem:[#allocation9 + $0x1a8] sm:$0xff]  ;;  %v152_v36 = vld [vmem:[#allocation9 + $0x1b8] sm:$0xff]  ;;  %v2402_v37 = vpack.c.bf16 %v147_v32, %v145_v31  ;;  %v149_v41 = vld [vmem:[#allocation9 + $0x1a0] sm:$0xff]  ;;  %v168_v6 = vsub.s32 0, %v167_v5  ;;  %v172_v10 = vsub.s32 1, %v167_v5 }
  0x6f   :  { %1456 = vmatprep.subr.bf16.mxu0 %v2336_v34  ;;  %1522 = vmatpush1.bf16.msra.mxu1 %v2333_v33  ;;  %v2405_v38 = vpack.c.bf16 %v152_v36, %v150_v35  ;;  %v151_v42 = vld [vmem:[#allocation9 + $0x1b0] sm:$0xff]  ;;  %v154_v43 = vld [vmem:[#allocation9 + $0x1c8] sm:$0xff]  ;;  %v156_v44 = vld [vmem:[#allocation9 + $0x1d8] sm:$0xff] }
  0x70   :  { %1524 = vmatprep.subr.bf16.mxu1 %v2336_v34  ;;  %v2410_v45 = vpack.c.bf16 %v151_v42, %v149_v41  ;;  %v2413_v46 = vpack.c.bf16 %v156_v44, %v154_v43  ;;  %v153_v49 = vld [vmem:[#allocation9 + $0x1c0] sm:$0xff]  ;;  %v155_v50 = vld [vmem:[#allocation9 + $0x1d0] sm:$0xff]  ;;  %v158_v51 = vld [vmem:[#allocation9 + $0x1e8] sm:$0xff] }
  0x71   :  { %v160_v52 = vld [vmem:[#allocation9 + $0x1f8] sm:$0xff]  ;;  %v2418_v55 = vpack.c.bf16 %v155_v50, %v153_v49  ;;  %v157_v57 = vld [vmem:[#allocation9 + $0x1e0] sm:$0xff]  ;;  %v159_v58 = vld [vmem:[#allocation9 + $0x1f0] sm:$0xff] }
  0x72   :  { %1458 = vmatpush1.bf16.msra.mxu0 %v2339_v39  ;;  %v2421_v56 = vpack.c.bf16 %v160_v52, %v158_v51  ;;  %v2426_v61 = vpack.c.bf16 %v159_v58, %v157_v57  ;;  %v89_v62 = vld [vmem:[#allocation11] sm:$0xff]  ;;  %v483_v63 = vld [vmem:[#allocation3 + $0x10] sm:$0xff]  ;;  %v161_v7 = vld [vmem:[#allocation8] sm:$0x3] }
  0x73   :  { %1460 = vmatprep.subr.bf16.mxu0 %v2342_v40  ;;  %1526 = vmatpush1.bf16.msra.mxu1 %v2339_v39  ;;  %v2479_v13 = vrot.slane %v161_v7, %v168_v6  ;;  %v2481_v14 = vrot.slane %v161_v7, %v172_v10  ;;  %v637_v31 = vld [vmem:[#allocation3 + $0x18] sm:$0xff]  ;;  %v791_v44 = vld [vmem:[#allocation3 + $0x20] sm:$0xff] }
  0x74   :  { %1528 = vmatprep.subr.bf16.mxu1 %v2342_v40 }
  0x76   :  { %1462 = vmatpush1.bf16.msra.mxu0 %v2345_v47 }
  0x77   :  { %1464 = vmatprep.subr.bf16.mxu0 %v2348_v48  ;;  %1530 = vmatpush1.bf16.msra.mxu1 %v2345_v47 }
  0x78   :  { %1532 = vmatprep.subr.bf16.mxu1 %v2348_v48 }
  0x7a   :  { %1466 = vmatpush1.bf16.msra.mxu0 %v2354_v53 }
  0x7b   :  { %1468 = vmatprep.subr.bf16.mxu0 %v2357_v54  ;;  %1534 = vmatpush1.bf16.msra.mxu1 %v2354_v53 }
  0x7c   :  { %1536 = vmatprep.subr.bf16.mxu1 %v2357_v54 }
  0x7e   :  { %1470 = vmatpush1.bf16.msra.mxu0 %v2362_v59 }
  0x7f   :  { %1472 = vmatprep.subr.bf16.mxu0 %v2365_v60  ;;  %1538 = vmatpush1.bf16.msra.mxu1 %v2362_v59 }
  0x80   :  { %1540 = vmatprep.subr.bf16.mxu1 %v2365_v60 }
  0x82   :  { %1474 = vmatpush1.bf16.msra.mxu0 %v2370_v2 }
  0x83   :  { %1476 = vmatprep.subr.bf16.mxu0 %v2373_v3  ;;  %1542 = vmatpush1.bf16.msra.mxu1 %v2370_v2 }
  0x84   :  { %1544 = vmatprep.subr.bf16.mxu1 %v2373_v3 }
  0x86   :  { %1478 = vmatpush1.bf16.msra.mxu0 %v2378_v11 }
  0x87   :  { %1480 = vmatprep.subr.bf16.mxu0 %v2381_v12  ;;  %1546 = vmatpush1.bf16.msra.mxu1 %v2378_v11 }
  0x88   :  { %1548 = vmatprep.subr.bf16.mxu1 %v2381_v12 }
  0x8a   :  { %1482 = vmatpush1.bf16.msra.mxu0 %v2386_v19 }
  0x8b   :  { %1484 = vmatprep.subr.bf16.mxu0 %v2389_v20  ;;  %1550 = vmatpush1.bf16.msra.mxu1 %v2386_v19 }
  0x8c   :  { %1552 = vmatprep.subr.bf16.mxu1 %v2389_v20 }
  0x8e   :  { %1486 = vmatpush1.bf16.msra.mxu0 %v2394_v29 }
  0x8f   :  { %1488 = vmatprep.subr.bf16.mxu0 %v2397_v30  ;;  %1554 = vmatpush1.bf16.msra.mxu1 %v2394_v29 }
  0x90   :  { %1556 = vmatprep.subr.bf16.mxu1 %v2397_v30 }
  0x92   :  { %1490 = vmatpush1.bf16.msra.mxu0 %v2402_v37 }
  0x93   :  { %1492 = vmatprep.subr.bf16.mxu0 %v2405_v38  ;;  %1558 = vmatpush1.bf16.msra.mxu1 %v2402_v37 }
  0x94   :  { %1560 = vmatprep.subr.bf16.mxu1 %v2405_v38 }
  0x96   :  { %1494 = vmatpush1.bf16.msra.mxu0 %v2410_v45 }
  0x97   :  { %1496 = vmatprep.subr.bf16.mxu0 %v2413_v46  ;;  %1562 = vmatpush1.bf16.msra.mxu1 %v2410_v45 }
  0x98   :  { %1564 = vmatprep.subr.bf16.mxu1 %v2413_v46 }
  0x9a   :  { %1498 = vmatpush1.bf16.msra.mxu0 %v2418_v55 }
  0x9b   :  { %1500 = vmatprep.subr.bf16.mxu0 %v2421_v56  ;;  %1566 = vmatpush1.bf16.msra.mxu1 %v2418_v55 }
  0x9c   :  { %1568 = vmatprep.subr.bf16.mxu1 %v2421_v56 }
  0x9e   :  { %1502 = vmatpush1.bf16.msra.mxu0 %v2426_v61 }
  0x9f   :  { %1572 = vmatprep.subr.bf16.mxu0 %v2303_v4  ;;  %1570 = vmatpush1.bf16.msra.mxu1 %v2426_v61 }
  0xa0   :  { %1640 = vmatprep.subr.bf16.mxu1 %v2303_v4 }
  0xa1   :  { %316 = vmatmul.mubr.f32.vlgmr.msra.gmra.mrb[0].mxu0 %v89_v62  ;;  %v945_v62 = vld [vmem:[#allocation3 + $0x28] sm:$0xff] }
  0xa2   :  { %1574 = vmatpush1.bf16.msra.mxu0 %v2305_v8  ;;  %551 = vmatprep.mubr.f32.mxu0 %v2203_v0 }
  0xa3   :  { %1576 = vmatprep.subr.bf16.mxu0 %v2307_v9 }
  0xa5   :  { %1429 = vmatmul.mubr.msk.f32.vlgmr.msra.gmra.mrb[2].mxu0 %vm176_vm0, %v483_v63 }
  0xa6   :  { %1578 = vmatpush1.bf16.msra.mxu0 %v2312_v15 }
  0xa7   :  { %1580 = vmatprep.subr.bf16.mxu0 %v2316_v16 }
  0xaa   :  { %1582 = vmatpush1.bf16.msra.mxu0 %v2321_v21 }
  0xab   :  { %1584 = vmatprep.subr.bf16.mxu0 %v2324_v22 }
  0xae   :  { %1586 = vmatpush1.bf16.msra.mxu0 %v2327_v27 }
  0xaf   :  { %1588 = vmatprep.subr.bf16.mxu0 %v2330_v28 }
  0xb2   :  { %1590 = vmatpush1.bf16.msra.mxu0 %v2333_v33 }
  0xb3   :  { %1592 = vmatprep.subr.bf16.mxu0 %v2336_v34 }
  0xb6   :  { %1594 = vmatpush1.bf16.msra.mxu0 %v2339_v39 }
  0xb7   :  { %1596 = vmatprep.subr.bf16.mxu0 %v2342_v40 }
  0xba   :  { %1598 = vmatpush1.bf16.msra.mxu0 %v2345_v47 }
  0xbb   :  { %1600 = vmatprep.subr.bf16.mxu0 %v2348_v48 }
  0xbe   :  { %1602 = vmatpush1.bf16.msra.mxu0 %v2354_v53 }
  0xbf   :  { %1604 = vmatprep.subr.bf16.mxu0 %v2357_v54 }
  0xc2   :  { %1606 = vmatpush1.bf16.msra.mxu0 %v2362_v59 }
  0xc3   :  { %1608 = vmatprep.subr.bf16.mxu0 %v2365_v60 }
  0xc6   :  { %1610 = vmatpush1.bf16.msra.mxu0 %v2370_v2 }
  0xc7   :  { %1612 = vmatprep.subr.bf16.mxu0 %v2373_v3 }
  0xca   :  { %1614 = vmatpush1.bf16.msra.mxu0 %v2378_v11 }
  0xcb   :  { %1616 = vmatprep.subr.bf16.mxu0 %v2381_v12 }
  0xce   :  { %1618 = vmatpush1.bf16.msra.mxu0 %v2386_v19 }
  0xcf   :  { %1620 = vmatprep.subr.bf16.mxu0 %v2389_v20 }
  0xd2   :  { %1622 = vmatpush1.bf16.msra.mxu0 %v2394_v29 }
  0xd3   :  { %1624 = vmatprep.subr.bf16.mxu0 %v2397_v30 }
  0xd6   :  { %1626 = vmatpush1.bf16.msra.mxu0 %v2402_v37 }
  0xd7   :  { %1628 = vmatprep.subr.bf16.mxu0 %v2405_v38 }
  0xda   :  { %1630 = vmatpush1.bf16.msra.mxu0 %v2410_v45 }
  0xdb   :  { %1632 = vmatprep.subr.bf16.mxu0 %v2413_v46 }
  0xde   :  { %1634 = vmatpush1.bf16.msra.mxu0 %v2418_v55 }
  0xdf   :  { %1636 = vmatprep.subr.bf16.mxu0 %v2421_v56 }
  0xe2   :  { %1638 = vmatpush1.bf16.msra.mxu0 %v2426_v61 }
  0xe3   :  { %1708 = vmatprep.subr.bf16.mxu0 %v2303_v4 }
 0x174   :  { %v317_v17 = vpop.f32.mrb[0].mxu0 }
 0x175   :  { %v1979_v18 = vadd.f32 %v317_v17, %v2479_v13  ;;  %v319_v23 = vpop.f32.mrb[1].mxu0 }
 0x176   :  { %v1980_v24 = vadd.f32 %v319_v23, %v2481_v14 }
 0x177   :  { %2022 = vtanh.f32 %v1979_v18 }
 0x178   :  { %2024 = vtanh.f32 %v1980_v24 }
 0x181   :  { %v2023_v25 = vpop.eup %2022 }
 0x182   :  { %v2025_v26 = vpop.eup %2024  ;;  %326 = vst [vmem:[#allocation12] sm:$0xff] %v2023_v25 }
 0x183   :  { %327 = vst [vmem:[#allocation12 + $0x8] sm:$0xff] %v2025_v26  ;;  %468 = vmatprep.mubr.f32.mxu1 %v2025_v26 }
 0x184   :  { %469 = vmatmul.mubr.f32.vlgmr.msra.gmra.mrb[0].mxu1 %v2023_v25 }
 0x185   :  { %1642 = vmatpush1.bf16.msra.mxu1 %v2305_v8  ;;  %705 = vmatprep.mubr.f32.mxu1 %v2203_v0 }
 0x186   :  { %1644 = vmatprep.subr.bf16.mxu1 %v2307_v9 }
 0x188   :  { %1430 = vmatmul.mubr.msk.f32.vlgmr.msra.gmra.mrb[2].mxu1 %vm176_vm0, %v637_v31  ;;  %v1253_v31 = vld [vmem:[#allocation3 + $0x38] sm:$0xff] }
 0x189   :  { %1646 = vmatpush1.bf16.msra.mxu1 %v2312_v15 }
 0x18a   :  { %1648 = vmatprep.subr.bf16.mxu1 %v2316_v16 }
 0x18d   :  { %1650 = vmatpush1.bf16.msra.mxu1 %v2321_v21 }
 0x18e   :  { %1652 = vmatprep.subr.bf16.mxu1 %v2324_v22 }
 0x191   :  { %1654 = vmatpush1.bf16.msra.mxu1 %v2327_v27 }
 0x192   :  { %1656 = vmatprep.subr.bf16.mxu1 %v2330_v28 }
 0x195   :  { %1658 = vmatpush1.bf16.msra.mxu1 %v2333_v33 }
 0x196   :  { %1660 = vmatprep.subr.bf16.mxu1 %v2336_v34 }
 0x199   :  { %1662 = vmatpush1.bf16.msra.mxu1 %v2339_v39 }
 0x19a   :  { %1664 = vmatprep.subr.bf16.mxu1 %v2342_v40 }
 0x19d   :  { %1666 = vmatpush1.bf16.msra.mxu1 %v2345_v47 }
 0x19e   :  { %1668 = vmatprep.subr.bf16.mxu1 %v2348_v48 }
 0x1a1   :  { %1670 = vmatpush1.bf16.msra.mxu1 %v2354_v53 }
 0x1a2   :  { %1672 = vmatprep.subr.bf16.mxu1 %v2357_v54 }
 0x1a5   :  { %1674 = vmatpush1.bf16.msra.mxu1 %v2362_v59 }
 0x1a6   :  { %1676 = vmatprep.subr.bf16.mxu1 %v2365_v60 }
 0x1a9   :  { %1678 = vmatpush1.bf16.msra.mxu1 %v2370_v2 }
 0x1aa   :  { %1680 = vmatprep.subr.bf16.mxu1 %v2373_v3 }
 0x1ad   :  { %1682 = vmatpush1.bf16.msra.mxu1 %v2378_v11 }
 0x1ae   :  { %1684 = vmatprep.subr.bf16.mxu1 %v2381_v12 }
 0x1b1   :  { %1686 = vmatpush1.bf16.msra.mxu1 %v2386_v19 }
 0x1b2   :  { %1688 = vmatprep.subr.bf16.mxu1 %v2389_v20 }
 0x1b5   :  { %1690 = vmatpush1.bf16.msra.mxu1 %v2394_v29 }
 0x1b6   :  { %1692 = vmatprep.subr.bf16.mxu1 %v2397_v30 }
 0x1b9   :  { %1694 = vmatpush1.bf16.msra.mxu1 %v2402_v37 }
 0x1ba   :  { %1696 = vmatprep.subr.bf16.mxu1 %v2405_v38 }
 0x1bd   :  { %1698 = vmatpush1.bf16.msra.mxu1 %v2410_v45 }
 0x1be   :  { %1700 = vmatprep.subr.bf16.mxu1 %v2413_v46 }
 0x1c1   :  { %1702 = vmatpush1.bf16.msra.mxu1 %v2418_v55 }
 0x1c2   :  { %1704 = vmatprep.subr.bf16.mxu1 %v2421_v56 }
 0x1c5   :  { %1706 = vmatpush1.bf16.msra.mxu1 %v2426_v61 }
 0x1c6   :  { %1776 = vmatprep.subr.bf16.mxu1 %v2303_v4 }
 0x257   :  { %v470_v32 = vpop.f32.mrb[0].mxu1 }
 0x258   :  { %v1981_v35 = vadd.f32 %v470_v32, %v2479_v13  ;;  %v472_v36 = vpop.f32.mrb[1].mxu1 }
 0x259   :  { %v1982_v41 = vadd.f32 %v472_v36, %v2481_v14 }
 0x25a   :  { %2026 = vtanh.f32 %v1981_v35 }
 0x25b   :  { %2028 = vtanh.f32 %v1982_v41 }
 0x264   :  { %v2027_v42 = vpop.eup %2026 }
 0x265   :  { %v2029_v43 = vpop.eup %2028  ;;  %480 = vst [vmem:[#allocation12 + $0x10] sm:$0xff] %v2027_v42 }
 0x266   :  { %481 = vst [vmem:[#allocation12 + $0x18] sm:$0xff] %v2029_v43  ;;  %622 = vmatprep.mubr.f32.mxu0 %v2029_v43 }
 0x267   :  { %623 = vmatmul.mubr.f32.vlgmr.msra.gmra.mrb[2].mxu0 %v2027_v42 }
 0x268   :  { %1710 = vmatpush1.bf16.msra.mxu0 %v2305_v8  ;;  %859 = vmatprep.mubr.f32.mxu0 %v2203_v0 }
 0x269   :  { %1712 = vmatprep.subr.bf16.mxu0 %v2307_v9 }
 0x26b   :  { %1431 = vmatmul.mubr.msk.f32.vlgmr.msra.gmra.mrb[4].mxu0 %vm176_vm0, %v791_v44 }
 0x26c   :  { %1714 = vmatpush1.bf16.msra.mxu0 %v2312_v15 }
 0x26d   :  { %1716 = vmatprep.subr.bf16.mxu0 %v2316_v16 }
 0x270   :  { %1718 = vmatpush1.bf16.msra.mxu0 %v2321_v21 }
 0x271   :  { %1720 = vmatprep.subr.bf16.mxu0 %v2324_v22 }
 0x274   :  { %1722 = vmatpush1.bf16.msra.mxu0 %v2327_v27 }
 0x275   :  { %1724 = vmatprep.subr.bf16.mxu0 %v2330_v28 }
 0x278   :  { %1726 = vmatpush1.bf16.msra.mxu0 %v2333_v33 }
 0x279   :  { %1728 = vmatprep.subr.bf16.mxu0 %v2336_v34 }
 0x27c   :  { %1730 = vmatpush1.bf16.msra.mxu0 %v2339_v39 }
 0x27d   :  { %1732 = vmatprep.subr.bf16.mxu0 %v2342_v40 }
 0x280   :  { %1734 = vmatpush1.bf16.msra.mxu0 %v2345_v47 }
 0x281   :  { %1736 = vmatprep.subr.bf16.mxu0 %v2348_v48 }
 0x284   :  { %1738 = vmatpush1.bf16.msra.mxu0 %v2354_v53 }
 0x285   :  { %1740 = vmatprep.subr.bf16.mxu0 %v2357_v54 }
 0x288   :  { %1742 = vmatpush1.bf16.msra.mxu0 %v2362_v59 }
 0x289   :  { %1744 = vmatprep.subr.bf16.mxu0 %v2365_v60 }
 0x28c   :  { %1746 = vmatpush1.bf16.msra.mxu0 %v2370_v2 }
 0x28d   :  { %1748 = vmatprep.subr.bf16.mxu0 %v2373_v3 }
 0x290   :  { %1750 = vmatpush1.bf16.msra.mxu0 %v2378_v11 }
 0x291   :  { %1752 = vmatprep.subr.bf16.mxu0 %v2381_v12 }
 0x294   :  { %1754 = vmatpush1.bf16.msra.mxu0 %v2386_v19 }
 0x295   :  { %1756 = vmatprep.subr.bf16.mxu0 %v2389_v20 }
 0x298   :  { %1758 = vmatpush1.bf16.msra.mxu0 %v2394_v29 }
 0x299   :  { %1760 = vmatprep.subr.bf16.mxu0 %v2397_v30 }
 0x29c   :  { %1762 = vmatpush1.bf16.msra.mxu0 %v2402_v37 }
 0x29d   :  { %1764 = vmatprep.subr.bf16.mxu0 %v2405_v38 }
 0x2a0   :  { %1766 = vmatpush1.bf16.msra.mxu0 %v2410_v45 }
 0x2a1   :  { %1768 = vmatprep.subr.bf16.mxu0 %v2413_v46 }
 0x2a4   :  { %1770 = vmatpush1.bf16.msra.mxu0 %v2418_v55 }
 0x2a5   :  { %1772 = vmatprep.subr.bf16.mxu0 %v2421_v56 }
 0x2a8   :  { %1774 = vmatpush1.bf16.msra.mxu0 %v2426_v61 }
 0x2a9   :  { %1844 = vmatprep.subr.bf16.mxu0 %v2303_v4 }
 0x33a   :  { %v624_v49 = vpop.f32.mrb[2].mxu0 }
 0x33b   :  { %v1983_v50 = vadd.f32 %v624_v49, %v2479_v13  ;;  %v626_v51 = vpop.f32.mrb[3].mxu0 }
 0x33c   :  { %v1984_v52 = vadd.f32 %v626_v51, %v2481_v14 }
 0x33d   :  { %2030 = vtanh.f32 %v1983_v50 }
 0x33e   :  { %2032 = vtanh.f32 %v1984_v52 }
 0x347   :  { %v2031_v57 = vpop.eup %2030 }
 0x348   :  { %v2033_v58 = vpop.eup %2032  ;;  %634 = vst [vmem:[#allocation12 + $0x20] sm:$0xff] %v2031_v57 }
 0x349   :  { %635 = vst [vmem:[#allocation12 + $0x28] sm:$0xff] %v2033_v58  ;;  %776 = vmatprep.mubr.f32.mxu1 %v2033_v58 }
 0x34a   :  { %777 = vmatmul.mubr.f32.vlgmr.msra.gmra.mrb[2].mxu1 %v2031_v57 }
 0x34b   :  { %1778 = vmatpush1.bf16.msra.mxu1 %v2305_v8  ;;  %1013 = vmatprep.mubr.f32.mxu1 %v2203_v0 }
 0x34c   :  { %1780 = vmatprep.subr.bf16.mxu1 %v2307_v9 }
 0x34e   :  { %1432 = vmatmul.mubr.msk.f32.vlgmr.msra.gmra.mrb[4].mxu1 %vm176_vm0, %v945_v62 }
 0x34f   :  { %1782 = vmatpush1.bf16.msra.mxu1 %v2312_v15 }
 0x350   :  { %1784 = vmatprep.subr.bf16.mxu1 %v2316_v16 }
 0x353   :  { %1786 = vmatpush1.bf16.msra.mxu1 %v2321_v21 }
 0x354   :  { %1788 = vmatprep.subr.bf16.mxu1 %v2324_v22 }
 0x357   :  { %1790 = vmatpush1.bf16.msra.mxu1 %v2327_v27 }
 0x358   :  { %1792 = vmatprep.subr.bf16.mxu1 %v2330_v28 }
 0x35b   :  { %1794 = vmatpush1.bf16.msra.mxu1 %v2333_v33 }
 0x35c   :  { %1796 = vmatprep.subr.bf16.mxu1 %v2336_v34 }
 0x35f   :  { %1798 = vmatpush1.bf16.msra.mxu1 %v2339_v39 }
 0x360   :  { %1800 = vmatprep.subr.bf16.mxu1 %v2342_v40 }
 0x363   :  { %1802 = vmatpush1.bf16.msra.mxu1 %v2345_v47 }
 0x364   :  { %1804 = vmatprep.subr.bf16.mxu1 %v2348_v48 }
 0x367   :  { %1806 = vmatpush1.bf16.msra.mxu1 %v2354_v53 }
 0x368   :  { %1808 = vmatprep.subr.bf16.mxu1 %v2357_v54 }
 0x36b   :  { %1810 = vmatpush1.bf16.msra.mxu1 %v2362_v59 }
 0x36c   :  { %1812 = vmatprep.subr.bf16.mxu1 %v2365_v60 }
 0x36f   :  { %1814 = vmatpush1.bf16.msra.mxu1 %v2370_v2 }
 0x370   :  { %1816 = vmatprep.subr.bf16.mxu1 %v2373_v3 }
 0x373   :  { %1818 = vmatpush1.bf16.msra.mxu1 %v2378_v11 }
 0x374   :  { %1820 = vmatprep.subr.bf16.mxu1 %v2381_v12 }
 0x377   :  { %1822 = vmatpush1.bf16.msra.mxu1 %v2386_v19 }
 0x378   :  { %1824 = vmatprep.subr.bf16.mxu1 %v2389_v20 }
 0x37b   :  { %1826 = vmatpush1.bf16.msra.mxu1 %v2394_v29 }
 0x37c   :  { %1828 = vmatprep.subr.bf16.mxu1 %v2397_v30 }
 0x37f   :  { %1830 = vmatpush1.bf16.msra.mxu1 %v2402_v37 }
 0x380   :  { %1832 = vmatprep.subr.bf16.mxu1 %v2405_v38 }
 0x383   :  { %1834 = vmatpush1.bf16.msra.mxu1 %v2410_v45 }
 0x384   :  { %1836 = vmatprep.subr.bf16.mxu1 %v2413_v46 }
 0x387   :  { %1838 = vmatpush1.bf16.msra.mxu1 %v2418_v55 }
 0x388   :  { %1840 = vmatprep.subr.bf16.mxu1 %v2421_v56 }
 0x38b   :  { %1842 = vmatpush1.bf16.msra.mxu1 %v2426_v61 }
 0x38c   :  { %1912 = vmatprep.subr.bf16.mxu1 %v2303_v4  ;;  %v1099_v4 = vld [vmem:[#allocation3 + $0x30] sm:$0xff] }
 0x41d   :  { %v778_v63 = vpop.f32.mrb[2].mxu1 }
 0x41e   :  { %v1985_v1 = vadd.f32 %v778_v63, %v2479_v13  ;;  %v780_v5 = vpop.f32.mrb[3].mxu1 }
 0x41f   :  { %v1986_v6 = vadd.f32 %v780_v5, %v2481_v14 }
 0x420   :  { %2034 = vtanh.f32 %v1985_v1 }
 0x421   :  { %2036 = vtanh.f32 %v1986_v6 }
 0x42a   :  { %v2035_v7 = vpop.eup %2034 }
 0x42b   :  { %v2037_v10 = vpop.eup %2036  ;;  %788 = vst [vmem:[#allocation12 + $0x30] sm:$0xff] %v2035_v7 }
 0x42c   :  { %789 = vst [vmem:[#allocation12 + $0x38] sm:$0xff] %v2037_v10  ;;  %930 = vmatprep.mubr.f32.mxu0 %v2037_v10 }
 0x42d   :  { %931 = vmatmul.mubr.f32.vlgmr.msra.gmra.mrb[4].mxu0 %v2035_v7 }
 0x42e   :  { %1846 = vmatpush1.bf16.msra.mxu0 %v2305_v8  ;;  %1167 = vmatprep.mubr.f32.mxu0 %v2203_v0 }
 0x42f   :  { %1848 = vmatprep.subr.bf16.mxu0 %v2307_v9 }
 0x431   :  { %1433 = vmatmul.mubr.msk.f32.vlgmr.msra.gmra.mrb[6].mxu0 %vm176_vm0, %v1099_v4 }
 0x432   :  { %1850 = vmatpush1.bf16.msra.mxu0 %v2312_v15 }
 0x433   :  { %1852 = vmatprep.subr.bf16.mxu0 %v2316_v16 }
 0x436   :  { %1854 = vmatpush1.bf16.msra.mxu0 %v2321_v21 }
 0x437   :  { %1856 = vmatprep.subr.bf16.mxu0 %v2324_v22 }
 0x43a   :  { %1858 = vmatpush1.bf16.msra.mxu0 %v2327_v27 }
 0x43b   :  { %1860 = vmatprep.subr.bf16.mxu0 %v2330_v28 }
 0x43e   :  { %1862 = vmatpush1.bf16.msra.mxu0 %v2333_v33 }
 0x43f   :  { %1864 = vmatprep.subr.bf16.mxu0 %v2336_v34 }
 0x442   :  { %1866 = vmatpush1.bf16.msra.mxu0 %v2339_v39 }
 0x443   :  { %1868 = vmatprep.subr.bf16.mxu0 %v2342_v40 }
 0x446   :  { %1870 = vmatpush1.bf16.msra.mxu0 %v2345_v47 }
 0x447   :  { %1872 = vmatprep.subr.bf16.mxu0 %v2348_v48 }
 0x44a   :  { %1874 = vmatpush1.bf16.msra.mxu0 %v2354_v53 }
 0x44b   :  { %1876 = vmatprep.subr.bf16.mxu0 %v2357_v54 }
 0x44e   :  { %1878 = vmatpush1.bf16.msra.mxu0 %v2362_v59 }
 0x44f   :  { %1880 = vmatprep.subr.bf16.mxu0 %v2365_v60 }
 0x452   :  { %1882 = vmatpush1.bf16.msra.mxu0 %v2370_v2 }
 0x453   :  { %1884 = vmatprep.subr.bf16.mxu0 %v2373_v3 }
 0x456   :  { %1886 = vmatpush1.bf16.msra.mxu0 %v2378_v11 }
 0x457   :  { %1888 = vmatprep.subr.bf16.mxu0 %v2381_v12 }
 0x45a   :  { %1890 = vmatpush1.bf16.msra.mxu0 %v2386_v19 }
 0x45b   :  { %1892 = vmatprep.subr.bf16.mxu0 %v2389_v20 }
 0x45e   :  { %1894 = vmatpush1.bf16.msra.mxu0 %v2394_v29 }
 0x45f   :  { %1896 = vmatprep.subr.bf16.mxu0 %v2397_v30 }
 0x462   :  { %1898 = vmatpush1.bf16.msra.mxu0 %v2402_v37 }
 0x463   :  { %1900 = vmatprep.subr.bf16.mxu0 %v2405_v38 }
 0x466   :  { %1902 = vmatpush1.bf16.msra.mxu0 %v2410_v45 }
 0x467   :  { %1904 = vmatprep.subr.bf16.mxu0 %v2413_v46 }
 0x46a   :  { %1906 = vmatpush1.bf16.msra.mxu0 %v2418_v55 }
 0x46b   :  { %1908 = vmatprep.subr.bf16.mxu0 %v2421_v56 }
 0x46e   :  { %1910 = vmatpush1.bf16.msra.mxu0 %v2426_v61 }
 0x500   :  { %v932_v17 = vpop.f32.mrb[4].mxu0 }
 0x501   :  { %v1987_v18 = vadd.f32 %v932_v17, %v2479_v13  ;;  %v934_v23 = vpop.f32.mrb[5].mxu0 }
 0x502   :  { %v1988_v24 = vadd.f32 %v934_v23, %v2481_v14 }
 0x503   :  { %2038 = vtanh.f32 %v1987_v18 }
 0x504   :  { %2040 = vtanh.f32 %v1988_v24 }
 0x50d   :  { %v2039_v25 = vpop.eup %2038 }
 0x50e   :  { %v2041_v26 = vpop.eup %2040  ;;  %942 = vst [vmem:[#allocation12 + $0x40] sm:$0xff] %v2039_v25 }
 0x50f   :  { %943 = vst [vmem:[#allocation12 + $0x48] sm:$0xff] %v2041_v26  ;;  %1084 = vmatprep.mubr.f32.mxu1 %v2041_v26 }
 0x510   :  { %1085 = vmatmul.mubr.f32.vlgmr.msra.gmra.mrb[4].mxu1 %v2039_v25 }
 0x511   :  { %1914 = vmatpush1.bf16.msra.mxu1 %v2305_v8  ;;  %1321 = vmatprep.mubr.f32.mxu1 %v2203_v0 }
 0x512   :  { %1916 = vmatprep.subr.bf16.mxu1 %v2307_v9 }
 0x514   :  { %1434 = vmatmul.mubr.msk.f32.vlgmr.msra.gmra.mrb[6].mxu1 %vm176_vm0, %v1253_v31 }
 0x515   :  { %1918 = vmatpush1.bf16.msra.mxu1 %v2312_v15 }
 0x516   :  { %1920 = vmatprep.subr.bf16.mxu1 %v2316_v16 }
 0x519   :  { %1922 = vmatpush1.bf16.msra.mxu1 %v2321_v21 }
 0x51a   :  { %1924 = vmatprep.subr.bf16.mxu1 %v2324_v22 }
 0x51d   :  { %1926 = vmatpush1.bf16.msra.mxu1 %v2327_v27 }
 0x51e   :  { %1928 = vmatprep.subr.bf16.mxu1 %v2330_v28 }
 0x521   :  { %1930 = vmatpush1.bf16.msra.mxu1 %v2333_v33 }
 0x522   :  { %1932 = vmatprep.subr.bf16.mxu1 %v2336_v34 }
 0x525   :  { %1934 = vmatpush1.bf16.msra.mxu1 %v2339_v39 }
 0x526   :  { %1936 = vmatprep.subr.bf16.mxu1 %v2342_v40 }
 0x529   :  { %1938 = vmatpush1.bf16.msra.mxu1 %v2345_v47 }
 0x52a   :  { %1940 = vmatprep.subr.bf16.mxu1 %v2348_v48 }
 0x52d   :  { %1942 = vmatpush1.bf16.msra.mxu1 %v2354_v53 }
 0x52e   :  { %1944 = vmatprep.subr.bf16.mxu1 %v2357_v54 }
 0x531   :  { %1946 = vmatpush1.bf16.msra.mxu1 %v2362_v59 }
 0x532   :  { %1948 = vmatprep.subr.bf16.mxu1 %v2365_v60 }
 0x535   :  { %1950 = vmatpush1.bf16.msra.mxu1 %v2370_v2 }
 0x536   :  { %1952 = vmatprep.subr.bf16.mxu1 %v2373_v3 }
 0x539   :  { %1954 = vmatpush1.bf16.msra.mxu1 %v2378_v11 }
 0x53a   :  { %1956 = vmatprep.subr.bf16.mxu1 %v2381_v12 }
 0x53d   :  { %1958 = vmatpush1.bf16.msra.mxu1 %v2386_v19 }
 0x53e   :  { %1960 = vmatprep.subr.bf16.mxu1 %v2389_v20 }
 0x541   :  { %1962 = vmatpush1.bf16.msra.mxu1 %v2394_v29 }
 0x542   :  { %1964 = vmatprep.subr.bf16.mxu1 %v2397_v30 }
 0x545   :  { %1966 = vmatpush1.bf16.msra.mxu1 %v2402_v37 }
 0x546   :  { %1968 = vmatprep.subr.bf16.mxu1 %v2405_v38 }
 0x549   :  { %1970 = vmatpush1.bf16.msra.mxu1 %v2410_v45 }
 0x54a   :  { %1972 = vmatprep.subr.bf16.mxu1 %v2413_v46 }
 0x54d   :  { %1974 = vmatpush1.bf16.msra.mxu1 %v2418_v55 }
 0x54e   :  { %1976 = vmatprep.subr.bf16.mxu1 %v2421_v56 }
 0x551   :  { %1978 = vmatpush1.bf16.msra.mxu1 %v2426_v61 }
 0x5e3   :  { %v1086_v0 = vpop.f32.mrb[4].mxu1 }
 0x5e4   :  { %v1989_v8 = vadd.f32 %v1086_v0, %v2479_v13  ;;  %v1088_v9 = vpop.f32.mrb[5].mxu1 }
 0x5e5   :  { %v1990_v15 = vadd.f32 %v1088_v9, %v2481_v14 }
 0x5e6   :  { %2042 = vtanh.f32 %v1989_v8 }
 0x5e7   :  { %2044 = vtanh.f32 %v1990_v15 }
 0x5f0   :  { %v2043_v16 = vpop.eup %2042 }
 0x5f1   :  { %v2045_v21 = vpop.eup %2044  ;;  %1096 = vst [vmem:[#allocation12 + $0x50] sm:$0xff] %v2043_v16 }
 0x5f2   :  { %1097 = vst [vmem:[#allocation12 + $0x58] sm:$0xff] %v2045_v21  ;;  %1238 = vmatprep.mubr.f32.mxu0 %v2045_v21 }
 0x5f3   :  { %1239 = vmatmul.mubr.f32.vlgmr.msra.gmra.mrb[6].mxu0 %v2043_v16 }
 0x6c6   :  { %v1240_v22 = vpop.f32.mrb[6].mxu0 }
 0x6c7   :  { %v1991_v27 = vadd.f32 %v1240_v22, %v2479_v13  ;;  %v1242_v28 = vpop.f32.mrb[7].mxu0 }
 0x6c8   :  { %v1992_v33 = vadd.f32 %v1242_v28, %v2481_v14 }
 0x6c9   :  { %2046 = vtanh.f32 %v1991_v27 }
 0x6ca   :  { %2048 = vtanh.f32 %v1992_v33 }
 0x6d3   :  { %v2047_v34 = vpop.eup %2046 }
 0x6d4   :  { %v2049_v39 = vpop.eup %2048  ;;  %1250 = vst [vmem:[#allocation12 + $0x60] sm:$0xff] %v2047_v34 }
 0x6d5   :  { %1251 = vst [vmem:[#allocation12 + $0x68] sm:$0xff] %v2049_v39  ;;  %1392 = vmatprep.mubr.f32.mxu1 %v2049_v39 }
 0x6d6   :  { %1393 = vmatmul.mubr.f32.vlgmr.msra.gmra.mrb[6].mxu1 %v2047_v34 }
 0x7a9   :  { %v1394_v40 = vpop.f32.mrb[6].mxu1 }
 0x7aa   :  { %v1993_v47 = vadd.f32 %v1394_v40, %v2479_v13  ;;  %v1396_v48 = vpop.f32.mrb[7].mxu1 }
 0x7ab   :  { %v1994_v53 = vadd.f32 %v1396_v48, %v2481_v14 }
 0x7ac   :  { %2050 = vtanh.f32 %v1993_v47 }
 0x7ad   :  { %2052 = vtanh.f32 %v1994_v53 }
 0x7b6   :  { %v2051_v54 = vpop.eup %2050 }
 0x7b7   :  { %v2053_v59 = vpop.eup %2052  ;;  %1404 = vst [vmem:[#allocation12 + $0x70] sm:$0xff] %v2051_v54 }
 0x7b8   :  { %1405 = vst [vmem:[#allocation12 + $0x78] sm:$0xff] %v2053_v59 }
 0x7b9   :  { %2175 = shalt.err (!%p2172_p2)
}
 0x7ba   :  { %s2176_s9 = scalar_lea.hbm %s2697_s5, 2048 }
 0x7bb   :  { %p2177_p3 = scmp.ne.s32.totalorder %s2697_s5, %s2176_s9  ;;  %p2180_p4 = scmp.lt.u32.totalorder %s2176_s9, %s2697_s5 }
 0x7bd   :  { %p2182_p5 = pnand %p2180_p4, %p2177_p3 }
 0x7bf   :  { %2185 = shalt.err (!%p2182_p5)
}
 0x7c0   :  { %1419 = dma.vmem_to_hbm [thread:$0]  %s1414_s30, 2048, %s2697_s5, [#allocation5], %s2195_s28, %s2195_s28, %s2196_s29  }
 0x7c1   :  { %2192 = dma.done.wait [#allocation5], 2048  }
 0x7c2   :  { %2193 = vsyncadd [#allocation5], 4294965248 }
 0x7c3   :  { %1423 = vsyncpa [#allocation4], 1 }
 0x7c4   :  { %1424 = vsyncpa [#allocation7], 1 }
 0x7c5   :  { %1425 = vsyncpa [#allocation10], 1 }
 0x7c6   :  { %1426 = vsyncpa [#allocation5], 1 }

</bundles_post_ra>
